<compile_context>
chip_gen: v7x
topology: tpu7x:2x2x1
jax: 0.10.0
libtpu: 0.0.40
codegen_flags: <defaults>
</compile_context>

<pallas_src>
import functools

import jax
import jax.numpy as jnp
from jax.experimental import pallas as pl
from jax.experimental.pallas import tpu as pltpu


# --------------------------------------------------------------------------
# small helpers
# --------------------------------------------------------------------------
_ROW_TILE = 512      # max rows per block (review: 512-wide tiles ~85% of HBM BW)
_COL_TILE = 512      # max output-feature columns per block


def _round_up(x, m):
    return (x + m - 1) // m * m


def _row_tiles(M, max_tm=_ROW_TILE):
    """Pick (padded_M, tile_m) for the row axis."""
    if M <= max_tm:
        Mp = _round_up(M, 8)
        return Mp, Mp
    Mp = _round_up(M, max_tm)
    return Mp, max_tm


def _col_tile(N, max_tn=_COL_TILE):
    """Pick a lane-aligned tile for the output-column axis."""
    for t in (max_tn, 256, 128):
        if N % t == 0:
            return t
    return N  # full dim (allowed for any size)


def _pad_rows(x, Mp):
    M = x.shape[0]
    if Mp == M:
        return x
    return jnp.pad(x, ((0, Mp - M), (0, 0)))


def _pick_vmem_limit():
    """~3/4 of physical VMEM, capped at 96 MiB (128 MiB parts) ; 48 MiB on v7x/fallback."""
    try:
        cap = int(pltpu.get_tpu_info().vmem_capacity_bytes)
        return max(32 * 1024 * 1024, min((cap * 3) // 4, 96 * 1024 * 1024))
    except Exception:
        return 48 * 1024 * 1024


_VMEM_LIMIT = _pick_vmem_limit()


# --------------------------------------------------------------------------
# fused LayerNorm -> Linear (-> GELU) (-> + residual)
#   LN result is cached in a VMEM bf16 scratch; recomputed only at j == 0.
# --------------------------------------------------------------------------
def _fused_linear_kernel(*refs, use_ln, activation, has_bias, add_residual):
    ln_ref = refs[-1]          # scratch (tm, K) bf16
    o_ref = refs[-2]
    it = iter(refs[:-2])
    x_ref = next(it)
    g_ref = b_ref = bias_ref = res_ref = None
    if use_ln:
        g_ref = next(it)
        b_ref = next(it)
    w_ref = next(it)
    if has_bias:
        bias_ref = next(it)
    if add_residual:
        res_ref = next(it)

    @pl.when(pl.program_id(1) == 0)
    def _():
        x = x_ref[...].astype(jnp.float32)
        if use_ln:
            mu = jnp.mean(x, axis=-1, keepdims=True)
            var = jnp.mean(jnp.square(x - mu), axis=-1, keepdims=True)
            x = (x - mu) * jax.lax.rsqrt(var + 1e-5)      # PyTorch LayerNorm eps
            x = x * g_ref[...].astype(jnp.float32) + b_ref[...].astype(jnp.float32)
        ln_ref[...] = x.astype(jnp.bfloat16)

    acc = jnp.dot(ln_ref[...], w_ref[...].astype(jnp.bfloat16),
                  preferred_element_type=jnp.float32)
    if has_bias:
        acc = acc + bias_ref[...].astype(jnp.float32)
    if activation == "gelu":
        # exact (erf) GELU, matching torch.nn.GELU default
        acc = 0.5 * acc * (1.0 + jax.lax.erf(acc * 0.7071067811865476))
    if add_residual:
        acc = acc + res_ref[...].astype(jnp.float32)
    o_ref[...] = acc.astype(o_ref.dtype)


def fused_linear(x2d, w, b=None, *, gamma=None, beta=None, residual=None,
                 activation=None, out_dtype=jnp.float32,
                 max_tm=_ROW_TILE, max_tn=_COL_TILE):
    """out = (LN(x) if gamma else x) @ w [+ b] [, gelu] [, + residual]"""
    M, K = x2d.shape
    N = w.shape[1]
    Mp, tm = _row_tiles(M, max_tm)
    tn = _col_tile(N, max_tn)
    use_ln = gamma is not None
    has_bias = b is not None
    add_res = residual is not None

    inputs = [_pad_rows(x2d, Mp)]
    in_specs = [pl.BlockSpec((tm, K), lambda i, j: (i, 0))]
    if use_ln:
        inputs += [gamma.reshape(1, K), beta.reshape(1, K)]
        in_specs += [pl.BlockSpec((1, K), lambda i, j: (0, 0)),
                     pl.BlockSpec((1, K), lambda i, j: (0, 0))]
    inputs += [w]
    in_specs += [pl.BlockSpec((K, tn), lambda i, j: (0, j))]
    if has_bias:
        inputs.append(b.reshape(1, N))
        in_specs.append(pl.BlockSpec((1, tn), lambda i, j: (0, j)))
    if add_res:
        inputs.append(_pad_rows(residual, Mp))
        in_specs.append(pl.BlockSpec((tm, tn), lambda i, j: (i, j)))

    kern = functools.partial(_fused_linear_kernel, use_ln=use_ln,
                             activation=activation, has_bias=has_bias,
                             add_residual=add_res)
    out = pl.pallas_call(
        kern,
        out_shape=jax.ShapeDtypeStruct((Mp, N), out_dtype),
        grid=(Mp // tm, N // tn),
        in_specs=in_specs,
        out_specs=pl.BlockSpec((tm, tn), lambda i, j: (i, j)),
        scratch_shapes=[pltpu.VMEM((tm, K), jnp.bfloat16)],   # cached LN(x) in bf16
        compiler_params=pltpu.CompilerParams(
            dimension_semantics=("parallel", "arbitrary"),
            vmem_limit_bytes=_VMEM_LIMIT),
    )(*inputs)
    return out[:M]       # no-op when the caller passed already-padded rows


# --------------------------------------------------------------------------
# fused MLP block on the residual stream:
#   y   = x + attn_proj                     (attention residual folded in here)
#   out = y + W2( GELU( W1( LN(y) ) + b1 ) ) + b2
# mlp_dim is streamed over a grid axis; the (M, mlp_dim) intermediate stays in VMEM.
# --------------------------------------------------------------------------
def _ffn_kernel(x_ref, a_ref, g_ref, b_ref, w1_ref, b1_ref, w2_ref, b2_ref, o_ref,
                ln_ref, acc_ref):
    f = pl.program_id(1)

    @pl.when(f == 0)
    def _():
        y = x_ref[...].astype(jnp.float32) + a_ref[...].astype(jnp.float32)
        mu = jnp.mean(y, axis=-1, keepdims=True)
        var = jnp.mean(jnp.square(y - mu), axis=-1, keepdims=True)
        h = (y - mu) * jax.lax.rsqrt(var + 1e-5)
        h = h * g_ref[...].astype(jnp.float32) + b_ref[...].astype(jnp.float32)
        ln_ref[...] = h.astype(jnp.bfloat16)
        acc_ref[...] = jnp.zeros_like(acc_ref)

    u = jnp.dot(ln_ref[...], w1_ref[...].astype(jnp.bfloat16),
                preferred_element_type=jnp.float32)
    u = u + b1_ref[...].astype(jnp.float32)
    u = 0.5 * u * (1.0 + jax.lax.erf(u * 0.7071067811865476))
    acc_ref[...] += jnp.dot(u.astype(jnp.bfloat16), w2_ref[...].astype(jnp.bfloat16),
                            preferred_element_type=jnp.float32)

    @pl.when(f == pl.num_programs(1) - 1)
    def _():
        y = x_ref[...].astype(jnp.float32) + a_ref[...].astype(jnp.float32)
        o_ref[...] = (acc_ref[...] + b2_ref[...].astype(jnp.float32) + y
                      ).astype(o_ref.dtype)


def fused_ffn(x2d, attn2d, gamma, beta, w1, b1, w2, b2,
              *, max_tm=_ROW_TILE, max_tf=_COL_TILE):
    M, D = x2d.shape
    F = w1.shape[1]
    Mp, tm = _row_tiles(M, max_tm)
    tf = _col_tile(F, max_tf)
    out = pl.pallas_call(
        _ffn_kernel,
        out_shape=jax.ShapeDtypeStruct((Mp, D), jnp.float32),
        grid=(Mp // tm, F // tf),
        in_specs=[
            pl.BlockSpec((tm, D), lambda i, f: (i, 0)),   # residual stream (f32)
            pl.BlockSpec((tm, D), lambda i, f: (i, 0)),   # attention projection (bf16)
            pl.BlockSpec((1, D), lambda i, f: (0, 0)),
            pl.BlockSpec((1, D), lambda i, f: (0, 0)),
            pl.BlockSpec((D, tf), lambda i, f: (0, f)),
            pl.BlockSpec((1, tf), lambda i, f: (0, f)),
            pl.BlockSpec((tf, D), lambda i, f: (f, 0)),
            pl.BlockSpec((1, D), lambda i, f: (0, 0)),
        ],
        out_specs=pl.BlockSpec((tm, D), lambda i, f: (i, 0)),
        scratch_shapes=[pltpu.VMEM((tm, D), jnp.bfloat16),
                        pltpu.VMEM((tm, D), jnp.float32)],
        compiler_params=pltpu.CompilerParams(
            dimension_semantics=("parallel", "arbitrary"),
            vmem_limit_bytes=_VMEM_LIMIT),
    )(_pad_rows(x2d, Mp), _pad_rows(attn2d, Mp),
      gamma.reshape(1, D), beta.reshape(1, D),
      w1, b1.reshape(1, F), w2, b2.reshape(1, D))
    return out[:M]


# --------------------------------------------------------------------------
# multi-head attention + fused output projection on a packed (B, N, 3*inner) qkv slab
#   out[b] = sum_h softmax(q_h k_h^T * scale) v_h @ W_o[h*Dh:(h+1)*Dh] + b_o
# (the "x + " residual is added inside the FFN kernel)
# --------------------------------------------------------------------------
def _attention_kernel(qkv_ref, wo_ref, bo_ref, o_ref, *, heads, dim_head, scale):
    inner = heads * dim_head
    N = qkv_ref.shape[1]
    dim = o_ref.shape[2]
    acc = jnp.zeros((N, dim), jnp.float32)
    for h in range(heads):                                    # static unrolled loop
        q = (qkv_ref[0, :, pl.ds(h * dim_head, dim_head)].astype(jnp.float32)
             * scale).astype(jnp.bfloat16)                    # (N, Dh), scale folded in
        k = qkv_ref[0, :, pl.ds(inner + h * dim_head, dim_head)].astype(jnp.bfloat16)
        v = qkv_ref[0, :, pl.ds(2 * inner + h * dim_head, dim_head)].astype(jnp.bfloat16)
        # scores = (q*scale) @ k^T  (contract on Dh, no explicit transpose)
        s = jax.lax.dot_general(q, k, (((1,), (1,)), ((), ())),
                                preferred_element_type=jnp.float32)
        s = s - jnp.max(s, axis=-1, keepdims=True)
        p = jnp.exp(s)
        p = p * pl.reciprocal(jnp.sum(p, axis=-1, keepdims=True), approx=True)
        head = jnp.dot(p.astype(jnp.bfloat16), v, preferred_element_type=jnp.float32)
        # fused output projection: per-head slice of W_o, accumulated in f32
        acc = acc + jnp.dot(head.astype(jnp.bfloat16),
                            wo_ref[pl.ds(h * dim_head, dim_head), :].astype(jnp.bfloat16),
                            preferred_element_type=jnp.float32)
    # single lane-dense (N, dim) store
    o_ref[0] = (acc + bo_ref[...].astype(jnp.float32)).astype(o_ref.dtype)


def attention(qkv3d, w_o, b_o, *, heads, dim_head, scale):
    # TODO(synk): for very long sequences (N >~ 1k) tile over query rows / heads
    # (flash-style) to respect v7x's 64 MiB VMEM and shard across its 2 TensorCores;
    # for this model N = num_patches + 1 is small so one block per batch is fine.
    B, N, _ = qkv3d.shape
    inner = heads * dim_head
    dim = w_o.shape[1]
    kern = functools.partial(_attention_kernel, heads=heads,
                             dim_head=dim_head, scale=scale)
    return pl.pallas_call(
        kern,
        out_shape=jax.ShapeDtypeStruct((B, N, dim), jnp.bfloat16),
        grid=(B,),
        in_specs=[pl.BlockSpec((1, N, 3 * inner), lambda b: (b, 0, 0)),
                  pl.BlockSpec((inner, dim), lambda b: (0, 0)),
                  pl.BlockSpec((1, dim), lambda b: (0, 0))],
        out_specs=pl.BlockSpec((1, N, dim), lambda b: (b, 0, 0)),
        compiler_params=pltpu.CompilerParams(
            dimension_semantics=("parallel",),
            vmem_limit_bytes=_VMEM_LIMIT),
    )(qkv3d, w_o, b_o.reshape(1, dim))


# --------------------------------------------------------------------------
# standalone tiled LayerNorm (used twice per forward, outside the layer loop)
# --------------------------------------------------------------------------
def _layernorm_kernel(x_ref, g_ref, b_ref, o_ref):
    x = x_ref[...].astype(jnp.float32)
    mu = jnp.mean(x, axis=-1, keepdims=True)
    var = jnp.mean(jnp.square(x - mu), axis=-1, keepdims=True)
    y = (x - mu) * jax.lax.rsqrt(var + 1e-5)
    o_ref[...] = (y * g_ref[...].astype(jnp.float32)
                  + b_ref[...].astype(jnp.float32)).astype(o_ref.dtype)


def layernorm(x2d, gamma, beta, *, max_tm=_ROW_TILE):
    M, D = x2d.shape
    Mp, tm = _row_tiles(M, max_tm)
    out = pl.pallas_call(
        _layernorm_kernel,
        out_shape=jax.ShapeDtypeStruct((Mp, D), jnp.float32),
        grid=(Mp // tm,),
        in_specs=[pl.BlockSpec((tm, D), lambda i: (i, 0)),
                  pl.BlockSpec((1, D), lambda i: (0, 0)),
                  pl.BlockSpec((1, D), lambda i: (0, 0))],
        out_specs=pl.BlockSpec((tm, D), lambda i: (i, 0)),
        compiler_params=pltpu.CompilerParams(
            dimension_semantics=("parallel",),
            vmem_limit_bytes=_VMEM_LIMIT),
    )(_pad_rows(x2d, Mp), gamma.reshape(1, D), beta.reshape(1, D))
    return out[:M]


# --------------------------------------------------------------------------
# Parameter init (deterministic, synthetic).  Matmul weights stored in bf16.
# --------------------------------------------------------------------------
def init_params(key, *, input_dim, target_dim, patch_size, dim, depth, heads,
                dim_head, mlp_dim, channels):
    assert input_dim % patch_size == 0
    num_patches = input_dim // patch_size
    patch_dim = channels * patch_size
    inner = heads * dim_head

    def nrm(k, shape, scale=0.02, dtype=jnp.bfloat16):
        return (scale * jax.random.normal(k, shape, jnp.float32)).astype(dtype)

    keys = iter(jax.random.split(key, 8 + depth * 4))
    p = {
        "patch_ln1_g": jnp.ones((patch_dim,), jnp.float32),
        "patch_ln1_b": jnp.zeros((patch_dim,), jnp.float32),
        "patch_w": nrm(next(keys), (patch_dim, dim)),
        "patch_b": jnp.zeros((dim,), jnp.float32),
        "patch_ln2_g": jnp.ones((dim,), jnp.float32),
        "patch_ln2_b": jnp.zeros((dim,), jnp.float32),
        "pos_emb": nrm(next(keys), (1, num_patches + 1, dim), 1.0, jnp.float32),
        "cls": nrm(next(keys), (dim,), 1.0, jnp.float32),
        "final_ln_g": jnp.ones((dim,), jnp.float32),
        "final_ln_b": jnp.zeros((dim,), jnp.float32),
        "head_ln_g": jnp.ones((dim,), jnp.float32),
        "head_ln_b": jnp.zeros((dim,), jnp.float32),
        "head_w": nrm(next(keys), (dim, target_dim)),
        "head_b": jnp.zeros((target_dim,), jnp.float32),
    }
    layers = []
    for _ in range(depth):
        layers.append(dict(
            attn_ln_g=jnp.ones((dim,), jnp.float32),
            attn_ln_b=jnp.zeros((dim,), jnp.float32),
            w_qkv=nrm(next(keys), (dim, 3 * inner)),          # bias-free in reference
            w_o=nrm(next(keys), (inner, dim)),
            b_o=jnp.zeros((dim,), jnp.float32),
            ff_ln_g=jnp.ones((dim,), jnp.float32),
            ff_ln_b=jnp.zeros((dim,), jnp.float32),
            w1=nrm(next(keys), (dim, mlp_dim)),
            b1=jnp.zeros((mlp_dim,), jnp.float32),
            w2=nrm(next(keys), (mlp_dim, dim)),
            b2=jnp.zeros((dim,), jnp.float32),
        ))
    p["layers"] = layers
    return p


# --------------------------------------------------------------------------
# Forward pass (mirrors Model.forward; dropout p=0 -> identity)
# --------------------------------------------------------------------------
def vit_forward(params, series, *, patch_size, heads, dim_head):
    B, C, L = series.shape
    n = L // patch_size
    patch_dim = patch_size * C
    dim = params["patch_w"].shape[1]
    inner = heads * dim_head
    scale = dim_head ** -0.5

    # Rearrange 'b c (n p) -> b n (p c)'   (plain-JAX glue, once per forward)
    x = series.reshape(B, C, n, patch_size).transpose(0, 2, 3, 1).reshape(B, n, patch_dim)

    # to_patch_embedding: LN -> Linear (fused) -> LN
    x2 = fused_linear(x.reshape(B * n, patch_dim), params["patch_w"], params["patch_b"],
                      gamma=params["patch_ln1_g"], beta=params["patch_ln1_b"])
    x2 = layernorm(x2, params["patch_ln2_g"], params["patch_ln2_b"])
    x = x2.reshape(B, n, dim)

    # prepend cls token, add positional embedding
    cls = jnp.broadcast_to(params["cls"][None, None, :], (B, 1, dim)).astype(jnp.float32)
    x = jnp.concatenate([cls, x], axis=1)
    x = x + params["pos_emb"][:, : n + 1]
    N = n + 1
    M = B * N

    # Pad the row axis ONCE; the padded residual stream is carried through all layers.
    Mp, _ = _row_tiles(M)
    xp = _pad_rows(x.reshape(M, dim), Mp)                     # (Mp, dim) f32

    # Transformer: per layer ->
    #   fused(LN -> QKV, bf16 out, no bias)
    #   attention(all heads + fused W_o projection + b_o, bf16 out)
    #   fused(attn-residual add -> LN -> W1 -> GELU -> W2 -> + residual)
    for lp in params["layers"]:
        qkv = fused_linear(xp, lp["w_qkv"],
                           gamma=lp["attn_ln_g"], beta=lp["attn_ln_b"],
                           out_dtype=jnp.bfloat16)            # (Mp, 3*inner) bf16
        attn = attention(qkv[:M].reshape(B, N, 3 * inner),
                         lp["w_o"], lp["b_o"],
                         heads=heads, dim_head=dim_head, scale=scale)  # (B, N, dim) bf16
        attnp = _pad_rows(attn.reshape(M, dim), Mp)           # bf16, padded
        xp = fused_ffn(xp, attnp, lp["ff_ln_g"], lp["ff_ln_b"],
                       lp["w1"], lp["b1"], lp["w2"], lp["b2"])  # new residual stream (f32)

    # final norm is per-row -> only the cls rows matter for the output
    cls_tok = xp[:M].reshape(B, N, dim)[:, 0]                 # (B, dim)
    cls_tok = layernorm(cls_tok, params["final_ln_g"], params["final_ln_b"])

    # mlp_head: LN -> Linear (fused)
    out = fused_linear(cls_tok, params["head_w"], params["head_b"],
                       gamma=params["head_ln_g"], beta=params["head_ln_b"])
    return out


# --------------------------------------------------------------------------
if __name__ == "__main__":
    # Small-but-consistent configuration (module defaults are dim=1280/depth=32;
    # shrunk for the synthetic run).
    B = 2
    channels = 1
    input_dim = 64          # spectrum length L
    target_dim = 10
    patch_size = 16
    dim = 128
    depth = 2
    heads = 4
    dim_head = 32
    mlp_dim = 256

    key = jax.random.PRNGKey(0)
    pkey, xkey = jax.random.split(key)
    params = init_params(pkey, input_dim=input_dim, target_dim=target_dim,
                         patch_size=patch_size, dim=dim, depth=depth,
                         heads=heads, dim_head=dim_head, mlp_dim=mlp_dim,
                         channels=channels)

    series = jax.random.normal(xkey, (B, channels, input_dim), jnp.float32)

    fwd = jax.jit(functools.partial(vit_forward, patch_size=patch_size,
                                    heads=heads, dim_head=dim_head))
    out = fwd(params, series)
    out = jax.block_until_ready(out)
    assert out.shape == (B, target_dim)
    assert bool(jnp.all(jnp.isfinite(out)))
    print("KERNEL_OK")
</pallas_src>

<mosaic_0001>
module attributes {stable_mosaic.version = 11 : i64} {
  func.func @_fused_linear_kernel(%arg0: i32, %arg1: i32, %arg2: memref<8x16xf32, #tpu.memory_space<vmem>>, %arg3: memref<1x16xf32, #tpu.memory_space<vmem>>, %arg4: memref<1x16xf32, #tpu.memory_space<vmem>>, %arg5: memref<16x128xbf16, #tpu.memory_space<vmem>>, %arg6: memref<1x128xf32, #tpu.memory_space<vmem>>, %arg7: memref<8x128xf32, #tpu.memory_space<vmem>>, %arg8: memref<8x16xbf16, #tpu.memory_space<vmem>>) attributes {dimension_semantics = [#tpu.dimension_semantics<parallel>, #tpu.dimension_semantics<arbitrary>], iteration_bounds = array<i64: 1, 1>, scalar_prefetch = 0 : i64, scratch_operands = 1 : i64, tpu.core_type = #tpu.core_type<tc>, window_params = [{transform_indices = @transform_0, window_bounds = array<i64: 8, 16>}, {pipeline_mode = #tpu.pipeline_mode<synchronous>, transform_indices = @transform_1, window_bounds = array<i64: 1, 16>}, {pipeline_mode = #tpu.pipeline_mode<synchronous>, transform_indices = @transform_2, window_bounds = array<i64: 1, 16>}, {transform_indices = @transform_3, window_bounds = array<i64: 16, 128>}, {transform_indices = @transform_4, window_bounds = array<i64: 1, 128>}, {transform_indices = @transform_5, window_bounds = array<i64: 8, 128>}]} {
    %c0_i32 = arith.constant 0 : i32
    %0 = arith.cmpi eq, %arg1, %c0_i32 : i32
    %1 = arith.extui %0 : i1 to i32
    %c0_i32_0 = arith.constant 0 : i32
    %2 = arith.cmpi ne, %1, %c0_i32_0 : i32
    scf.if %2 {
      %c0_8 = arith.constant 0 : index
      %c0_9 = arith.constant 0 : index
      %10 = vector.load %arg2[%c0_8, %c0_9] : memref<8x16xf32, #tpu.memory_space<vmem>>, vector<8x16xf32>
      %cst_10 = arith.constant dense<0.000000e+00> : vector<8xf32>
      %11 = vector.multi_reduction <add>, %10, %cst_10 [1] : vector<8x16xf32> to vector<8xf32>
      %12 = vector.shape_cast %11 : vector<8xf32> to vector<8x1xf32>
      %cst_11 = arith.constant 1.600000e+01 : f32
      %13 = vector.broadcast %cst_11 : f32 to vector<8x1xf32>
      %14 = arith.divf %12, %13 : vector<8x1xf32>
      %15 = vector.broadcast %14 : vector<8x1xf32> to vector<8x16xf32>
      %16 = arith.subf %10, %15 : vector<8x16xf32>
      %17 = arith.mulf %16, %16 : vector<8x16xf32>
      %cst_12 = arith.constant dense<0.000000e+00> : vector<8xf32>
      %18 = vector.multi_reduction <add>, %17, %cst_12 [1] : vector<8x16xf32> to vector<8xf32>
      %19 = vector.shape_cast %18 : vector<8xf32> to vector<8x1xf32>
      %cst_13 = arith.constant 1.600000e+01 : f32
      %20 = vector.broadcast %cst_13 : f32 to vector<8x1xf32>
      %21 = arith.divf %19, %20 : vector<8x1xf32>
      %22 = vector.broadcast %14 : vector<8x1xf32> to vector<8x16xf32>
      %23 = arith.subf %10, %22 : vector<8x16xf32>
      %cst_14 = arith.constant 9.99999974E-6 : f32
      %24 = vector.broadcast %cst_14 : f32 to vector<8x1xf32>
      %25 = arith.addf %21, %24 : vector<8x1xf32>
      %26 = math.rsqrt %25 : vector<8x1xf32>
      %27 = vector.broadcast %26 : vector<8x1xf32> to vector<8x16xf32>
      %28 = arith.mulf %23, %27 : vector<8x16xf32>
      %c0_15 = arith.constant 0 : index
      %c0_16 = arith.constant 0 : index
      %29 = vector.load %arg3[%c0_15, %c0_16] : memref<1x16xf32, #tpu.memory_space<vmem>>, vector<1x16xf32>
      %30 = vector.broadcast %29 : vector<1x16xf32> to vector<8x16xf32>
      %31 = arith.mulf %28, %30 : vector<8x16xf32>
      %c0_17 = arith.constant 0 : index
      %c0_18 = arith.constant 0 : index
      %32 = vector.load %arg4[%c0_17, %c0_18] : memref<1x16xf32, #tpu.memory_space<vmem>>, vector<1x16xf32>
      %33 = vector.broadcast %32 : vector<1x16xf32> to vector<8x16xf32>
      %34 = arith.addf %31, %33 : vector<8x16xf32>
      %35 = arith.truncf %34 : vector<8x16xf32> to vector<8x16xbf16>
      %c0_19 = arith.constant 0 : index
      %c0_20 = arith.constant 0 : index
      %36 = vector.load %arg8[%c0_19, %c0_20] : memref<8x16xbf16, #tpu.memory_space<vmem>>, vector<8x16xbf16>
      tpu.vector_store %arg8[%c0_19, %c0_20], %35 {strides = array<i32>} : memref<8x16xbf16, #tpu.memory_space<vmem>>, vector<8x16xbf16>,
    } else {
    }
    %c0 = arith.constant 0 : index
    %c0_1 = arith.constant 0 : index
    %3 = vector.load %arg8[%c0, %c0_1] : memref<8x16xbf16, #tpu.memory_space<vmem>>, vector<8x16xbf16>
    %c0_2 = arith.constant 0 : index
    %c0_3 = arith.constant 0 : index
    %4 = vector.load %arg5[%c0_2, %c0_3] : memref<16x128xbf16, #tpu.memory_space<vmem>>, vector<16x128xbf16>
    %cst = arith.constant dense<0.000000e+00> : vector<8x128xf32>
    %5 = tpu.matmul %3, %4, %cst {dimension_numbers = #tpu.dot_dimension_numbers<[1], [0], [0], [1], [0, 0, 1, 1], [], []>} : vector<8x16xbf16>, vector<16x128xbf16>, vector<8x128xf32> -> vector<8x128xf32>
    %c0_4 = arith.constant 0 : index
    %c0_5 = arith.constant 0 : index
    %6 = vector.load %arg6[%c0_4, %c0_5] : memref<1x128xf32, #tpu.memory_space<vmem>>, vector<1x128xf32>
    %7 = vector.broadcast %6 : vector<1x128xf32> to vector<8x128xf32>
    %8 = arith.addf %5, %7 : vector<8x128xf32>
    %c0_6 = arith.constant 0 : index
    %c0_7 = arith.constant 0 : index
    %9 = vector.load %arg7[%c0_6, %c0_7] : memref<8x128xf32, #tpu.memory_space<vmem>>, vector<8x128xf32>
    tpu.vector_store %arg7[%c0_6, %c0_7], %8 {strides = array<i32>} : memref<8x128xf32, #tpu.memory_space<vmem>>, vector<8x128xf32>,
    return
  }
  func.func @transform_0(%arg0: i32, %arg1: i32) -> (i32, i32) {
    %c0_i32 = arith.constant 0 : i32
    %c0_i32_0 = arith.constant 0 : i32
    return %arg0, %c0_i32 : i32, i32
  }
  func.func @transform_1(%arg0: i32, %arg1: i32) -> (i32, i32) {
    %c0_i32 = arith.constant 0 : i32
    %c0_i32_0 = arith.constant 0 : i32
    %c0_i32_1 = arith.constant 0 : i32
    return %c0_i32, %c0_i32_0 : i32, i32
  }
  func.func @transform_2(%arg0: i32, %arg1: i32) -> (i32, i32) {
    %c0_i32 = arith.constant 0 : i32
    %c0_i32_0 = arith.constant 0 : i32
    %c0_i32_1 = arith.constant 0 : i32
    return %c0_i32, %c0_i32_0 : i32, i32
  }
  func.func @transform_3(%arg0: i32, %arg1: i32) -> (i32, i32) {
    %c0_i32 = arith.constant 0 : i32
    %c0_i32_0 = arith.constant 0 : i32
    return %c0_i32, %arg1 : i32, i32
  }
  func.func @transform_4(%arg0: i32, %arg1: i32) -> (i32, i32) {
    %c0_i32 = arith.constant 0 : i32
    %c0_i32_0 = arith.constant 0 : i32
    return %c0_i32, %arg1 : i32, i32
  }
  func.func @transform_5(%arg0: i32, %arg1: i32) -> (i32, i32) {
    %c0_i32 = arith.constant 0 : i32
    return %arg0, %arg1 : i32, i32
  }
}

module attributes {stable_mosaic.version = 11 : i64} {
  func.func @_layernorm_kernel(%arg0: i32, %arg1: memref<8x128xf32, #tpu.memory_space<vmem>>, %arg2: memref<1x128xf32, #tpu.memory_space<vmem>>, %arg3: memref<1x128xf32, #tpu.memory_space<vmem>>, %arg4: memref<8x128xf32, #tpu.memory_space<vmem>>) attributes {dimension_semantics = [#tpu.dimension_semantics<parallel>], iteration_bounds = array<i64: 1>, scalar_prefetch = 0 : i64, scratch_operands = 0 : i64, tpu.core_type = #tpu.core_type<tc>, window_params = [{transform_indices = @transform_0, window_bounds = array<i64: 8, 128>}, {pipeline_mode = #tpu.pipeline_mode<synchronous>, transform_indices = @transform_1, window_bounds = array<i64: 1, 128>}, {pipeline_mode = #tpu.pipeline_mode<synchronous>, transform_indices = @transform_2, window_bounds = array<i64: 1, 128>}, {transform_indices = @transform_3, window_bounds = array<i64: 8, 128>}]} {
    %c0 = arith.constant 0 : index
    %c0_0 = arith.constant 0 : index
    %0 = vector.load %arg1[%c0, %c0_0] : memref<8x128xf32, #tpu.memory_space<vmem>>, vector<8x128xf32>
    %cst = arith.constant dense<0.000000e+00> : vector<8xf32>
    %1 = vector.multi_reduction <add>, %0, %cst [1] : vector<8x128xf32> to vector<8xf32>
    %2 = vector.shape_cast %1 : vector<8xf32> to vector<8x1xf32>
    %cst_1 = arith.constant 1.280000e+02 : f32
    %3 = vector.broadcast %cst_1 : f32 to vector<8x1xf32>
    %4 = arith.divf %2, %3 : vector<8x1xf32>
    %5 = vector.broadcast %4 : vector<8x1xf32> to vector<8x128xf32>
    %6 = arith.subf %0, %5 : vector<8x128xf32>
    %7 = arith.mulf %6, %6 : vector<8x128xf32>
    %cst_2 = arith.constant dense<0.000000e+00> : vector<8xf32>
    %8 = vector.multi_reduction <add>, %7, %cst_2 [1] : vector<8x128xf32> to vector<8xf32>
    %9 = vector.shape_cast %8 : vector<8xf32> to vector<8x1xf32>
    %cst_3 = arith.constant 1.280000e+02 : f32
    %10 = vector.broadcast %cst_3 : f32 to vector<8x1xf32>
    %11 = arith.divf %9, %10 : vector<8x1xf32>
    %12 = vector.broadcast %4 : vector<8x1xf32> to vector<8x128xf32>
    %13 = arith.subf %0, %12 : vector<8x128xf32>
    %cst_4 = arith.constant 9.99999974E-6 : f32
    %14 = vector.broadcast %cst_4 : f32 to vector<8x1xf32>
    %15 = arith.addf %11, %14 : vector<8x1xf32>
    %16 = math.rsqrt %15 : vector<8x1xf32>
    %17 = vector.broadcast %16 : vector<8x1xf32> to vector<8x128xf32>
    %18 = arith.mulf %13, %17 : vector<8x128xf32>
    %c0_5 = arith.constant 0 : index
    %c0_6 = arith.constant 0 : index
    %19 = vector.load %arg2[%c0_5, %c0_6] : memref<1x128xf32, #tpu.memory_space<vmem>>, vector<1x128xf32>
    %20 = vector.broadcast %19 : vector<1x128xf32> to vector<8x128xf32>
    %21 = arith.mulf %18, %20 : vector<8x128xf32>
    %c0_7 = arith.constant 0 : index
    %c0_8 = arith.constant 0 : index
    %22 = vector.load %arg3[%c0_7, %c0_8] : memref<1x128xf32, #tpu.memory_space<vmem>>, vector<1x128xf32>
    %23 = vector.broadcast %22 : vector<1x128xf32> to vector<8x128xf32>
    %24 = arith.addf %21, %23 : vector<8x128xf32>
    %c0_9 = arith.constant 0 : index
    %c0_10 = arith.constant 0 : index
    %25 = vector.load %arg4[%c0_9, %c0_10] : memref<8x128xf32, #tpu.memory_space<vmem>>, vector<8x128xf32>
    tpu.vector_store %arg4[%c0_9, %c0_10], %24 {strides = array<i32>} : memref<8x128xf32, #tpu.memory_space<vmem>>, vector<8x128xf32>,
    return
  }
  func.func @transform_0(%arg0: i32) -> (i32, i32) {
    %c0_i32 = arith.constant 0 : i32
    %c0_i32_0 = arith.constant 0 : i32
    return %arg0, %c0_i32 : i32, i32
  }
  func.func @transform_1(%arg0: i32) -> (i32, i32) {
    %c0_i32 = arith.constant 0 : i32
    %c0_i32_0 = arith.constant 0 : i32
    %c0_i32_1 = arith.constant 0 : i32
    return %c0_i32, %c0_i32_0 : i32, i32
  }
  func.func @transform_2(%arg0: i32) -> (i32, i32) {
    %c0_i32 = arith.constant 0 : i32
    %c0_i32_0 = arith.constant 0 : i32
    %c0_i32_1 = arith.constant 0 : i32
    return %c0_i32, %c0_i32_0 : i32, i32
  }
  func.func @transform_3(%arg0: i32) -> (i32, i32) {
    %c0_i32 = arith.constant 0 : i32
    %c0_i32_0 = arith.constant 0 : i32
    return %arg0, %c0_i32 : i32, i32
  }
}

module attributes {stable_mosaic.version = 11 : i64} {
  func.func @_fused_linear_kernel(%arg0: i32, %arg1: i32, %arg2: memref<16x128xf32, #tpu.memory_space<vmem>>, %arg3: memref<1x128xf32, #tpu.memory_space<vmem>>, %arg4: memref<1x128xf32, #tpu.memory_space<vmem>>, %arg5: memref<128x128xbf16, #tpu.memory_space<vmem>>, %arg6: memref<16x128xbf16, #tpu.memory_space<vmem>>, %arg7: memref<16x128xbf16, #tpu.memory_space<vmem>>) attributes {dimension_semantics = [#tpu.dimension_semantics<parallel>, #tpu.dimension_semantics<arbitrary>], iteration_bounds = array<i64: 1, 3>, scalar_prefetch = 0 : i64, scratch_operands = 1 : i64, tpu.core_type = #tpu.core_type<tc>, window_params = [{transform_indices = @transform_0, window_bounds = array<i64: 16, 128>}, {pipeline_mode = #tpu.pipeline_mode<synchronous>, transform_indices = @transform_1, window_bounds = array<i64: 1, 128>}, {pipeline_mode = #tpu.pipeline_mode<synchronous>, transform_indices = @transform_2, window_bounds = array<i64: 1, 128>}, {transform_indices = @transform_3, window_bounds = array<i64: 128, 128>}, {transform_indices = @transform_4, window_bounds = array<i64: 16, 128>}]} {
    %c0_i32 = arith.constant 0 : i32
    %0 = arith.cmpi eq, %arg1, %c0_i32 : i32
    %1 = arith.extui %0 : i1 to i32
    %c0_i32_0 = arith.constant 0 : i32
    %2 = arith.cmpi ne, %1, %c0_i32_0 : i32
    scf.if %2 {
      %c0_6 = arith.constant 0 : index
      %c0_7 = arith.constant 0 : index
      %8 = vector.load %arg2[%c0_6, %c0_7] : memref<16x128xf32, #tpu.memory_space<vmem>>, vector<16x128xf32>
      %cst_8 = arith.constant dense<0.000000e+00> : vector<16xf32>
      %9 = vector.multi_reduction <add>, %8, %cst_8 [1] : vector<16x128xf32> to vector<16xf32>
      %10 = vector.shape_cast %9 : vector<16xf32> to vector<16x1xf32>
      %cst_9 = arith.constant 1.280000e+02 : f32
      %11 = vector.broadcast %cst_9 : f32 to vector<16x1xf32>
      %12 = arith.divf %10, %11 : vector<16x1xf32>
      %13 = vector.broadcast %12 : vector<16x1xf32> to vector<16x128xf32>
      %14 = arith.subf %8, %13 : vector<16x128xf32>
      %15 = arith.mulf %14, %14 : vector<16x128xf32>
      %cst_10 = arith.constant dense<0.000000e+00> : vector<16xf32>
      %16 = vector.multi_reduction <add>, %15, %cst_10 [1] : vector<16x128xf32> to vector<16xf32>
      %17 = vector.shape_cast %16 : vector<16xf32> to vector<16x1xf32>
      %cst_11 = arith.constant 1.280000e+02 : f32
      %18 = vector.broadcast %cst_11 : f32 to vector<16x1xf32>
      %19 = arith.divf %17, %18 : vector<16x1xf32>
      %20 = vector.broadcast %12 : vector<16x1xf32> to vector<16x128xf32>
      %21 = arith.subf %8, %20 : vector<16x128xf32>
      %cst_12 = arith.constant 9.99999974E-6 : f32
      %22 = vector.broadcast %cst_12 : f32 to vector<16x1xf32>
      %23 = arith.addf %19, %22 : vector<16x1xf32>
      %24 = math.rsqrt %23 : vector<16x1xf32>
      %25 = vector.broadcast %24 : vector<16x1xf32> to vector<16x128xf32>
      %26 = arith.mulf %21, %25 : vector<16x128xf32>
      %c0_13 = arith.constant 0 : index
      %c0_14 = arith.constant 0 : index
      %27 = vector.load %arg3[%c0_13, %c0_14] : memref<1x128xf32, #tpu.memory_space<vmem>>, vector<1x128xf32>
      %28 = vector.broadcast %27 : vector<1x128xf32> to vector<16x128xf32>
      %29 = arith.mulf %26, %28 : vector<16x128xf32>
      %c0_15 = arith.constant 0 : index
      %c0_16 = arith.constant 0 : index
      %30 = vector.load %arg4[%c0_15, %c0_16] : memref<1x128xf32, #tpu.memory_space<vmem>>, vector<1x128xf32>
      %31 = vector.broadcast %30 : vector<1x128xf32> to vector<16x128xf32>
      %32 = arith.addf %29, %31 : vector<16x128xf32>
      %33 = arith.truncf %32 : vector<16x128xf32> to vector<16x128xbf16>
      %c0_17 = arith.constant 0 : index
      %c0_18 = arith.constant 0 : index
      %34 = vector.load %arg7[%c0_17, %c0_18] : memref<16x128xbf16, #tpu.memory_space<vmem>>, vector<16x128xbf16>
      tpu.vector_store %arg7[%c0_17, %c0_18], %33 {strides = array<i32>} : memref<16x128xbf16, #tpu.memory_space<vmem>>, vector<16x128xbf16>,
    } else {
    }
    %c0 = arith.constant 0 : index
    %c0_1 = arith.constant 0 : index
    %3 = vector.load %arg7[%c0, %c0_1] : memref<16x128xbf16, #tpu.memory_space<vmem>>, vector<16x128xbf16>
    %c0_2 = arith.constant 0 : index
    %c0_3 = arith.constant 0 : index
    %4 = vector.load %arg5[%c0_2, %c0_3] : memref<128x128xbf16, #tpu.memory_space<vmem>>, vector<128x128xbf16>
    %cst = arith.constant dense<0.000000e+00> : vector<16x128xf32>
    %5 = tpu.matmul %3, %4, %cst {dimension_numbers = #tpu.dot_dimension_numbers<[1], [0], [0], [1], [0, 0, 1, 1], [], []>} : vector<16x128xbf16>, vector<128x128xbf16>, vector<16x128xf32> -> vector<16x128xf32>
    %6 = arith.truncf %5 : vector<16x128xf32> to vector<16x128xbf16>
    %c0_4 = arith.constant 0 : index
    %c0_5 = arith.constant 0 : index
    %7 = vector.load %arg6[%c0_4, %c0_5] : memref<16x128xbf16, #tpu.memory_space<vmem>>, vector<16x128xbf16>
    tpu.vector_store %arg6[%c0_4, %c0_5], %6 {strides = array<i32>} : memref<16x128xbf16, #tpu.memory_space<vmem>>, vector<16x128xbf16>,
    return
  }
  func.func @transform_0(%arg0: i32, %arg1: i32) -> (i32, i32) {
    %c0_i32 = arith.constant 0 : i32
    %c0_i32_0 = arith.constant 0 : i32
    return %arg0, %c0_i32 : i32, i32
  }
  func.func @transform_1(%arg0: i32, %arg1: i32) -> (i32, i32) {
    %c0_i32 = arith.constant 0 : i32
    %c0_i32_0 = arith.constant 0 : i32
    %c0_i32_1 = arith.constant 0 : i32
    return %c0_i32, %c0_i32_0 : i32, i32
  }
  func.func @transform_2(%arg0: i32, %arg1: i32) -> (i32, i32) {
    %c0_i32 = arith.constant 0 : i32
    %c0_i32_0 = arith.constant 0 : i32
    %c0_i32_1 = arith.constant 0 : i32
    return %c0_i32, %c0_i32_0 : i32, i32
  }
  func.func @transform_3(%arg0: i32, %arg1: i32) -> (i32, i32) {
    %c0_i32 = arith.constant 0 : i32
    %c0_i32_0 = arith.constant 0 : i32
    return %c0_i32, %arg1 : i32, i32
  }
  func.func @transform_4(%arg0: i32, %arg1: i32) -> (i32, i32) {
    %c0_i32 = arith.constant 0 : i32
    return %arg0, %arg1 : i32, i32
  }
}

module attributes {stable_mosaic.version = 11 : i64} {
  func.func @_attention_kernel(%arg0: i32, %arg1: memref<1x5x384xbf16, #tpu.memory_space<vmem>>, %arg2: memref<128x128xbf16, #tpu.memory_space<vmem>>, %arg3: memref<1x128xf32, #tpu.memory_space<vmem>>, %arg4: memref<1x5x128xbf16, #tpu.memory_space<vmem>>) attributes {dimension_semantics = [#tpu.dimension_semantics<parallel>], iteration_bounds = array<i64: 2>, scalar_prefetch = 0 : i64, scratch_operands = 0 : i64, tpu.core_type = #tpu.core_type<tc>, window_params = [{transform_indices = @transform_0, window_bounds = array<i64: 1, 5, 384>}, {pipeline_mode = #tpu.pipeline_mode<synchronous>, transform_indices = @transform_1, window_bounds = array<i64: 128, 128>}, {pipeline_mode = #tpu.pipeline_mode<synchronous>, transform_indices = @transform_2, window_bounds = array<i64: 1, 128>}, {transform_indices = @transform_3, window_bounds = array<i64: 1, 5, 128>}]} {
    %cst = arith.constant 0.000000e+00 : f32
    %0 = vector.broadcast %cst : f32 to vector<5x128xf32>
    %c0 = arith.constant 0 : index
    %c0_0 = arith.constant 0 : index
    %c0_1 = arith.constant 0 : index
    %1 = vector.load %arg1[%c0, %c0_0, %c0_1] : memref<1x5x384xbf16, #tpu.memory_space<vmem>>, vector<1x5x32xbf16>
    %2 = vector.shape_cast %1 : vector<1x5x32xbf16> to vector<5x32xbf16>
    %3 = arith.extf %2 : vector<5x32xbf16> to vector<5x32xf32>
    %cst_2 = arith.constant 0.176776692 : f32
    %4 = vector.broadcast %cst_2 : f32 to vector<5x32xf32>
    %5 = arith.mulf %3, %4 : vector<5x32xf32>
    %6 = arith.truncf %5 : vector<5x32xf32> to vector<5x32xbf16>
    %c0_3 = arith.constant 0 : index
    %c0_4 = arith.constant 0 : index
    %c128 = arith.constant 128 : index
    %7 = vector.load %arg1[%c0_3, %c0_4, %c128] : memref<1x5x384xbf16, #tpu.memory_space<vmem>>, vector<1x5x32xbf16>
    %8 = vector.shape_cast %7 : vector<1x5x32xbf16> to vector<5x32xbf16>
    %c0_5 = arith.constant 0 : index
    %c0_6 = arith.constant 0 : index
    %c256 = arith.constant 256 : index
    %9 = vector.load %arg1[%c0_5, %c0_6, %c256] : memref<1x5x384xbf16, #tpu.memory_space<vmem>>, vector<1x5x32xbf16>
    %10 = vector.shape_cast %9 : vector<1x5x32xbf16> to vector<5x32xbf16>
    %cst_7 = arith.constant dense<0.000000e+00> : vector<5x5xf32>
    %11 = tpu.matmul %6, %8, %cst_7 {dimension_numbers = #tpu.dot_dimension_numbers<[1], [1], [0], [0], [0, 0, 1, 0], [], []>} : vector<5x32xbf16>, vector<5x32xbf16>, vector<5x5xf32> -> vector<5x5xf32>
    %cst_8 = arith.constant dense<0xFF800000> : vector<5xf32>
    %12 = vector.multi_reduction <maximumf>, %11, %cst_8 [1] : vector<5x5xf32> to vector<5xf32>
    %13 = vector.shape_cast %12 : vector<5xf32> to vector<5x1xf32>
    %14 = vector.broadcast %13 : vector<5x1xf32> to vector<5x5xf32>
    %15 = arith.subf %11, %14 : vector<5x5xf32>
    %16 = math.exp %15 : vector<5x5xf32>
    %cst_9 = arith.constant dense<0.000000e+00> : vector<5xf32>
    %17 = vector.multi_reduction <add>, %16, %cst_9 [1] : vector<5x5xf32> to vector<5xf32>
    %18 = vector.shape_cast %17 : vector<5xf32> to vector<5x1xf32>
    %19 = tpu.reciprocal %18 {approx = true} : vector<5x1xf32> -> vector<5x1xf32>
    %20 = vector.broadcast %19 : vector<5x1xf32> to vector<5x5xf32>
    %21 = arith.mulf %16, %20 : vector<5x5xf32>
    %22 = arith.truncf %21 : vector<5x5xf32> to vector<5x5xbf16>
    %cst_10 = arith.constant dense<0.000000e+00> : vector<5x32xf32>
    %23 = tpu.matmul %22, %10, %cst_10 {dimension_numbers = #tpu.dot_dimension_numbers<[1], [0], [0], [1], [0, 0, 1, 1], [], []>} : vector<5x5xbf16>, vector<5x32xbf16>, vector<5x32xf32> -> vector<5x32xf32>
    %24 = arith.truncf %23 : vector<5x32xf32> to vector<5x32xbf16>
    %c0_11 = arith.constant 0 : index
    %c0_12 = arith.constant 0 : index
    %25 = vector.load %arg2[%c0_11, %c0_12] : memref<128x128xbf16, #tpu.memory_space<vmem>>, vector<32x128xbf16>
    %cst_13 = arith.constant dense<0.000000e+00> : vector<5x128xf32>
    %26 = tpu.matmul %24, %25, %cst_13 {dimension_numbers = #tpu.dot_dimension_numbers<[1], [0], [0], [1], [0, 0, 1, 1], [], []>} : vector<5x32xbf16>, vector<32x128xbf16>, vector<5x128xf32> -> vector<5x128xf32>
    %27 = arith.addf %0, %26 : vector<5x128xf32>
    %c0_14 = arith.constant 0 : index
    %c0_15 = arith.constant 0 : index
    %c32 = arith.constant 32 : index
    %28 = vector.load %arg1[%c0_14, %c0_15, %c32] : memref<1x5x384xbf16, #tpu.memory_space<vmem>>, vector<1x5x32xbf16>
    %29 = vector.shape_cast %28 : vector<1x5x32xbf16> to vector<5x32xbf16>
    %30 = arith.extf %29 : vector<5x32xbf16> to vector<5x32xf32>
    %cst_16 = arith.constant 0.176776692 : f32
    %31 = vector.broadcast %cst_16 : f32 to vector<5x32xf32>
    %32 = arith.mulf %30, %31 : vector<5x32xf32>
    %33 = arith.truncf %32 : vector<5x32xf32> to vector<5x32xbf16>
    %c0_17 = arith.constant 0 : index
    %c0_18 = arith.constant 0 : index
    %c160 = arith.constant 160 : index
    %34 = vector.load %arg1[%c0_17, %c0_18, %c160] : memref<1x5x384xbf16, #tpu.memory_space<vmem>>, vector<1x5x32xbf16>
    %35 = vector.shape_cast %34 : vector<1x5x32xbf16> to vector<5x32xbf16>
    %c0_19 = arith.constant 0 : index
    %c0_20 = arith.constant 0 : index
    %c288 = arith.constant 288 : index
    %36 = vector.load %arg1[%c0_19, %c0_20, %c288] : memref<1x5x384xbf16, #tpu.memory_space<vmem>>, vector<1x5x32xbf16>
    %37 = vector.shape_cast %36 : vector<1x5x32xbf16> to vector<5x32xbf16>
    %cst_21 = arith.constant dense<0.000000e+00> : vector<5x5xf32>
    %38 = tpu.matmul %33, %35, %cst_21 {dimension_numbers = #tpu.dot_dimension_numbers<[1], [1], [0], [0], [0, 0, 1, 0], [], []>} : vector<5x32xbf16>, vector<5x32xbf16>, vector<5x5xf32> -> vector<5x5xf32>
    %cst_22 = arith.constant dense<0xFF800000> : vector<5xf32>
    %39 = vector.multi_reduction <maximumf>, %38, %cst_22 [1] : vector<5x5xf32> to vector<5xf32>
    %40 = vector.shape_cast %39 : vector<5xf32> to vector<5x1xf32>
    %41 = vector.broadcast %40 : vector<5x1xf32> to vector<5x5xf32>
    %42 = arith.subf %38, %41 : vector<5x5xf32>
    %43 = math.exp %42 : vector<5x5xf32>
    %cst_23 = arith.constant dense<0.000000e+00> : vector<5xf32>
    %44 = vector.multi_reduction <add>, %43, %cst_23 [1] : vector<5x5xf32> to vector<5xf32>
    %45 = vector.shape_cast %44 : vector<5xf32> to vector<5x1xf32>
    %46 = tpu.reciprocal %45 {approx = true} : vector<5x1xf32> -> vector<5x1xf32>
    %47 = vector.broadcast %46 : vector<5x1xf32> to vector<5x5xf32>
    %48 = arith.mulf %43, %47 : vector<5x5xf32>
    %49 = arith.truncf %48 : vector<5x5xf32> to vector<5x5xbf16>
    %cst_24 = arith.constant dense<0.000000e+00> : vector<5x32xf32>
    %50 = tpu.matmul %49, %37, %cst_24 {dimension_numbers = #tpu.dot_dimension_numbers<[1], [0], [0], [1], [0, 0, 1, 1], [], []>} : vector<5x5xbf16>, vector<5x32xbf16>, vector<5x32xf32> -> vector<5x32xf32>
    %51 = arith.truncf %50 : vector<5x32xf32> to vector<5x32xbf16>
    %c32_25 = arith.constant 32 : index
    %c0_26 = arith.constant 0 : index
    %52 = vector.load %arg2[%c32_25, %c0_26] : memref<128x128xbf16, #tpu.memory_space<vmem>>, vector<32x128xbf16>
    %cst_27 = arith.constant dense<0.000000e+00> : vector<5x128xf32>
    %53 = tpu.matmul %51, %52, %cst_27 {dimension_numbers = #tpu.dot_dimension_numbers<[1], [0], [0], [1], [0, 0, 1, 1], [], []>} : vector<5x32xbf16>, vector<32x128xbf16>, vector<5x128xf32> -> vector<5x128xf32>
    %54 = arith.addf %27, %53 : vector<5x128xf32>
    %c0_28 = arith.constant 0 : index
    %c0_29 = arith.constant 0 : index
    %c64 = arith.constant 64 : index
    %55 = vector.load %arg1[%c0_28, %c0_29, %c64] : memref<1x5x384xbf16, #tpu.memory_space<vmem>>, vector<1x5x32xbf16>
    %56 = vector.shape_cast %55 : vector<1x5x32xbf16> to vector<5x32xbf16>
    %57 = arith.extf %56 : vector<5x32xbf16> to vector<5x32xf32>
    %cst_30 = arith.constant 0.176776692 : f32
    %58 = vector.broadcast %cst_30 : f32 to vector<5x32xf32>
    %59 = arith.mulf %57, %58 : vector<5x32xf32>
    %60 = arith.truncf %59 : vector<5x32xf32> to vector<5x32xbf16>
    %c0_31 = arith.constant 0 : index
    %c0_32 = arith.constant 0 : index
    %c192 = arith.constant 192 : index
    %61 = vector.load %arg1[%c0_31, %c0_32, %c192] : memref<1x5x384xbf16, #tpu.memory_space<vmem>>, vector<1x5x32xbf16>
    %62 = vector.shape_cast %61 : vector<1x5x32xbf16> to vector<5x32xbf16>
    %c0_33 = arith.constant 0 : index
    %c0_34 = arith.constant 0 : index
    %c320 = arith.constant 320 : index
    %63 = vector.load %arg1[%c0_33, %c0_34, %c320] : memref<1x5x384xbf16, #tpu.memory_space<vmem>>, vector<1x5x32xbf16>
    %64 = vector.shape_cast %63 : vector<1x5x32xbf16> to vector<5x32xbf16>
    %cst_35 = arith.constant dense<0.000000e+00> : vector<5x5xf32>
    %65 = tpu.matmul %60, %62, %cst_35 {dimension_numbers = #tpu.dot_dimension_numbers<[1], [1], [0], [0], [0, 0, 1, 0], [], []>} : vector<5x32xbf16>, vector<5x32xbf16>, vector<5x5xf32> -> vector<5x5xf32>
    %cst_36 = arith.constant dense<0xFF800000> : vector<5xf32>
    %66 = vector.multi_reduction <maximumf>, %65, %cst_36 [1] : vector<5x5xf32> to vector<5xf32>
    %67 = vector.shape_cast %66 : vector<5xf32> to vector<5x1xf32>
    %68 = vector.broadcast %67 : vector<5x1xf32> to vector<5x5xf32>
    %69 = arith.subf %65, %68 : vector<5x5xf32>
    %70 = math.exp %69 : vector<5x5xf32>
    %cst_37 = arith.constant dense<0.000000e+00> : vector<5xf32>
    %71 = vector.multi_reduction <add>, %70, %cst_37 [1] : vector<5x5xf32> to vector<5xf32>
    %72 = vector.shape_cast %71 : vector<5xf32> to vector<5x1xf32>
    %73 = tpu.reciprocal %72 {approx = true} : vector<5x1xf32> -> vector<5x1xf32>
    %74 = vector.broadcast %73 : vector<5x1xf32> to vector<5x5xf32>
    %75 = arith.mulf %70, %74 : vector<5x5xf32>
    %76 = arith.truncf %75 : vector<5x5xf32> to vector<5x5xbf16>
    %cst_38 = arith.constant dense<0.000000e+00> : vector<5x32xf32>
    %77 = tpu.matmul %76, %64, %cst_38 {dimension_numbers = #tpu.dot_dimension_numbers<[1], [0], [0], [1], [0, 0, 1, 1], [], []>} : vector<5x5xbf16>, vector<5x32xbf16>, vector<5x32xf32> -> vector<5x32xf32>
    %78 = arith.truncf %77 : vector<5x32xf32> to vector<5x32xbf16>
    %c64_39 = arith.constant 64 : index
    %c0_40 = arith.constant 0 : index
    %79 = vector.load %arg2[%c64_39, %c0_40] : memref<128x128xbf16, #tpu.memory_space<vmem>>, vector<32x128xbf16>
    %cst_41 = arith.constant dense<0.000000e+00> : vector<5x128xf32>
    %80 = tpu.matmul %78, %79, %cst_41 {dimension_numbers = #tpu.dot_dimension_numbers<[1], [0], [0], [1], [0, 0, 1, 1], [], []>} : vector<5x32xbf16>, vector<32x128xbf16>, vector<5x128xf32> -> vector<5x128xf32>
    %81 = arith.addf %54, %80 : vector<5x128xf32>
    %c0_42 = arith.constant 0 : index
    %c0_43 = arith.constant 0 : index
    %c96 = arith.constant 96 : index
    %82 = vector.load %arg1[%c0_42, %c0_43, %c96] : memref<1x5x384xbf16, #tpu.memory_space<vmem>>, vector<1x5x32xbf16>
    %83 = vector.shape_cast %82 : vector<1x5x32xbf16> to vector<5x32xbf16>
    %84 = arith.extf %83 : vector<5x32xbf16> to vector<5x32xf32>
    %cst_44 = arith.constant 0.176776692 : f32
    %85 = vector.broadcast %cst_44 : f32 to vector<5x32xf32>
    %86 = arith.mulf %84, %85 : vector<5x32xf32>
    %87 = arith.truncf %86 : vector<5x32xf32> to vector<5x32xbf16>
    %c0_45 = arith.constant 0 : index
    %c0_46 = arith.constant 0 : index
    %c224 = arith.constant 224 : index
    %88 = vector.load %arg1[%c0_45, %c0_46, %c224] : memref<1x5x384xbf16, #tpu.memory_space<vmem>>, vector<1x5x32xbf16>
    %89 = vector.shape_cast %88 : vector<1x5x32xbf16> to vector<5x32xbf16>
    %c0_47 = arith.constant 0 : index
    %c0_48 = arith.constant 0 : index
    %c352 = arith.constant 352 : index
    %90 = vector.load %arg1[%c0_47, %c0_48, %c352] : memref<1x5x384xbf16, #tpu.memory_space<vmem>>, vector<1x5x32xbf16>
    %91 = vector.shape_cast %90 : vector<1x5x32xbf16> to vector<5x32xbf16>
    %cst_49 = arith.constant dense<0.000000e+00> : vector<5x5xf32>
    %92 = tpu.matmul %87, %89, %cst_49 {dimension_numbers = #tpu.dot_dimension_numbers<[1], [1], [0], [0], [0, 0, 1, 0], [], []>} : vector<5x32xbf16>, vector<5x32xbf16>, vector<5x5xf32> -> vector<5x5xf32>
    %cst_50 = arith.constant dense<0xFF800000> : vector<5xf32>
    %93 = vector.multi_reduction <maximumf>, %92, %cst_50 [1] : vector<5x5xf32> to vector<5xf32>
    %94 = vector.shape_cast %93 : vector<5xf32> to vector<5x1xf32>
    %95 = vector.broadcast %94 : vector<5x1xf32> to vector<5x5xf32>
    %96 = arith.subf %92, %95 : vector<5x5xf32>
    %97 = math.exp %96 : vector<5x5xf32>
    %cst_51 = arith.constant dense<0.000000e+00> : vector<5xf32>
    %98 = vector.multi_reduction <add>, %97, %cst_51 [1] : vector<5x5xf32> to vector<5xf32>
    %99 = vector.shape_cast %98 : vector<5xf32> to vector<5x1xf32>
    %100 = tpu.reciprocal %99 {approx = true} : vector<5x1xf32> -> vector<5x1xf32>
    %101 = vector.broadcast %100 : vector<5x1xf32> to vector<5x5xf32>
    %102 = arith.mulf %97, %101 : vector<5x5xf32>
    %103 = arith.truncf %102 : vector<5x5xf32> to vector<5x5xbf16>
    %cst_52 = arith.constant dense<0.000000e+00> : vector<5x32xf32>
    %104 = tpu.matmul %103, %91, %cst_52 {dimension_numbers = #tpu.dot_dimension_numbers<[1], [0], [0], [1], [0, 0, 1, 1], [], []>} : vector<5x5xbf16>, vector<5x32xbf16>, vector<5x32xf32> -> vector<5x32xf32>
    %105 = arith.truncf %104 : vector<5x32xf32> to vector<5x32xbf16>
    %c96_53 = arith.constant 96 : index
    %c0_54 = arith.constant 0 : index
    %106 = vector.load %arg2[%c96_53, %c0_54] : memref<128x128xbf16, #tpu.memory_space<vmem>>, vector<32x128xbf16>
    %cst_55 = arith.constant dense<0.000000e+00> : vector<5x128xf32>
    %107 = tpu.matmul %105, %106, %cst_55 {dimension_numbers = #tpu.dot_dimension_numbers<[1], [0], [0], [1], [0, 0, 1, 1], [], []>} : vector<5x32xbf16>, vector<32x128xbf16>, vector<5x128xf32> -> vector<5x128xf32>
    %108 = arith.addf %81, %107 : vector<5x128xf32>
    %c0_56 = arith.constant 0 : index
    %c0_57 = arith.constant 0 : index
    %109 = vector.load %arg3[%c0_56, %c0_57] : memref<1x128xf32, #tpu.memory_space<vmem>>, vector<1x128xf32>
    %110 = vector.broadcast %109 : vector<1x128xf32> to vector<5x128xf32>
    %111 = arith.addf %108, %110 : vector<5x128xf32>
    %112 = arith.truncf %111 : vector<5x128xf32> to vector<5x128xbf16>
    %c0_58 = arith.constant 0 : index
    %c0_59 = arith.constant 0 : index
    %c0_60 = arith.constant 0 : index
    %113 = vector.load %arg4[%c0_58, %c0_59, %c0_60] : memref<1x5x128xbf16, #tpu.memory_space<vmem>>, vector<1x5x128xbf16>
    %114 = vector.shape_cast %113 : vector<1x5x128xbf16> to vector<5x128xbf16>
    %115 = vector.shape_cast %112 : vector<5x128xbf16> to vector<1x5x128xbf16>
    tpu.vector_store %arg4[%c0_58, %c0_59, %c0_60], %115 {strides = array<i32>} : memref<1x5x128xbf16, #tpu.memory_space<vmem>>, vector<1x5x128xbf16>,
    return
  }
  func.func @transform_0(%arg0: i32) -> (i32, i32, i32) {
    %c0_i32 = arith.constant 0 : i32
    %c0_i32_0 = arith.constant 0 : i32
    %c0_i32_1 = arith.constant 0 : i32
    return %arg0, %c0_i32, %c0_i32_0 : i32, i32, i32
  }
  func.func @transform_1(%arg0: i32) -> (i32, i32) {
    %c0_i32 = arith.constant 0 : i32
    %c0_i32_0 = arith.constant 0 : i32
    %c0_i32_1 = arith.constant 0 : i32
    return %c0_i32, %c0_i32_0 : i32, i32
  }
  func.func @transform_2(%arg0: i32) -> (i32, i32) {
    %c0_i32 = arith.constant 0 : i32
    %c0_i32_0 = arith.constant 0 : i32
    %c0_i32_1 = arith.constant 0 : i32
    return %c0_i32, %c0_i32_0 : i32, i32
  }
  func.func @transform_3(%arg0: i32) -> (i32, i32, i32) {
    %c0_i32 = arith.constant 0 : i32
    %c0_i32_0 = arith.constant 0 : i32
    %c0_i32_1 = arith.constant 0 : i32
    return %arg0, %c0_i32, %c0_i32_0 : i32, i32, i32
  }
}

module attributes {stable_mosaic.version = 11 : i64} {
  func.func @_ffn_kernel(%arg0: i32, %arg1: i32, %arg2: memref<16x128xf32, #tpu.memory_space<vmem>>, %arg3: memref<16x128xbf16, #tpu.memory_space<vmem>>, %arg4: memref<1x128xf32, #tpu.memory_space<vmem>>, %arg5: memref<1x128xf32, #tpu.memory_space<vmem>>, %arg6: memref<128x256xbf16, #tpu.memory_space<vmem>>, %arg7: memref<1x256xf32, #tpu.memory_space<vmem>>, %arg8: memref<256x128xbf16, #tpu.memory_space<vmem>>, %arg9: memref<1x128xf32, #tpu.memory_space<vmem>>, %arg10: memref<16x128xf32, #tpu.memory_space<vmem>>, %arg11: memref<16x128xbf16, #tpu.memory_space<vmem>>, %arg12: memref<16x128xf32, #tpu.memory_space<vmem>>) attributes {dimension_semantics = [#tpu.dimension_semantics<parallel>, #tpu.dimension_semantics<arbitrary>], iteration_bounds = array<i64: 1, 1>, scalar_prefetch = 0 : i64, scratch_operands = 2 : i64, tpu.core_type = #tpu.core_type<tc>, window_params = [{transform_indices = @transform_0, window_bounds = array<i64: 16, 128>}, {transform_indices = @transform_1, window_bounds = array<i64: 16, 128>}, {pipeline_mode = #tpu.pipeline_mode<synchronous>, transform_indices = @transform_2, window_bounds = array<i64: 1, 128>}, {pipeline_mode = #tpu.pipeline_mode<synchronous>, transform_indices = @transform_3, window_bounds = array<i64: 1, 128>}, {transform_indices = @transform_4, window_bounds = array<i64: 128, 256>}, {transform_indices = @transform_5, window_bounds = array<i64: 1, 256>}, {transform_indices = @transform_6, window_bounds = array<i64: 256, 128>}, {pipeline_mode = #tpu.pipeline_mode<synchronous>, transform_indices = @transform_7, window_bounds = array<i64: 1, 128>}, {transform_indices = @transform_8, window_bounds = array<i64: 16, 128>}]} {
    %c0_i32 = arith.constant 0 : i32
    %0 = arith.cmpi eq, %arg1, %c0_i32 : i32
    %1 = arith.extui %0 : i1 to i32
    %c0_i32_0 = arith.constant 0 : i32
    %2 = arith.cmpi ne, %1, %c0_i32_0 : i32
    scf.if %2 {
      %c0_18 = arith.constant 0 : index
      %c0_19 = arith.constant 0 : index
      %26 = vector.load %arg2[%c0_18, %c0_19] : memref<16x128xf32, #tpu.memory_space<vmem>>, vector<16x128xf32>
      %c0_20 = arith.constant 0 : index
      %c0_21 = arith.constant 0 : index
      %27 = vector.load %arg3[%c0_20, %c0_21] : memref<16x128xbf16, #tpu.memory_space<vmem>>, vector<16x128xbf16>
      %28 = arith.extf %27 : vector<16x128xbf16> to vector<16x128xf32>
      %29 = arith.addf %26, %28 : vector<16x128xf32>
      %cst_22 = arith.constant dense<0.000000e+00> : vector<16xf32>
      %30 = vector.multi_reduction <add>, %29, %cst_22 [1] : vector<16x128xf32> to vector<16xf32>
      %31 = vector.shape_cast %30 : vector<16xf32> to vector<16x1xf32>
      %cst_23 = arith.constant 1.280000e+02 : f32
      %32 = vector.broadcast %cst_23 : f32 to vector<16x1xf32>
      %33 = arith.divf %31, %32 : vector<16x1xf32>
      %34 = vector.broadcast %33 : vector<16x1xf32> to vector<16x128xf32>
      %35 = arith.subf %29, %34 : vector<16x128xf32>
      %36 = arith.mulf %35, %35 : vector<16x128xf32>
      %cst_24 = arith.constant dense<0.000000e+00> : vector<16xf32>
      %37 = vector.multi_reduction <add>, %36, %cst_24 [1] : vector<16x128xf32> to vector<16xf32>
      %38 = vector.shape_cast %37 : vector<16xf32> to vector<16x1xf32>
      %cst_25 = arith.constant 1.280000e+02 : f32
      %39 = vector.broadcast %cst_25 : f32 to vector<16x1xf32>
      %40 = arith.divf %38, %39 : vector<16x1xf32>
      %41 = vector.broadcast %33 : vector<16x1xf32> to vector<16x128xf32>
      %42 = arith.subf %29, %41 : vector<16x128xf32>
      %cst_26 = arith.constant 9.99999974E-6 : f32
      %43 = vector.broadcast %cst_26 : f32 to vector<16x1xf32>
      %44 = arith.addf %40, %43 : vector<16x1xf32>
      %45 = math.rsqrt %44 : vector<16x1xf32>
      %46 = vector.broadcast %45 : vector<16x1xf32> to vector<16x128xf32>
      %47 = arith.mulf %42, %46 : vector<16x128xf32>
      %c0_27 = arith.constant 0 : index
      %c0_28 = arith.constant 0 : index
      %48 = vector.load %arg4[%c0_27, %c0_28] : memref<1x128xf32, #tpu.memory_space<vmem>>, vector<1x128xf32>
      %49 = vector.broadcast %48 : vector<1x128xf32> to vector<16x128xf32>
      %50 = arith.mulf %47, %49 : vector<16x128xf32>
      %c0_29 = arith.constant 0 : index
      %c0_30 = arith.constant 0 : index
      %51 = vector.load %arg5[%c0_29, %c0_30] : memref<1x128xf32, #tpu.memory_space<vmem>>, vector<1x128xf32>
      %52 = vector.broadcast %51 : vector<1x128xf32> to vector<16x128xf32>
      %53 = arith.addf %50, %52 : vector<16x128xf32>
      %54 = arith.truncf %53 : vector<16x128xf32> to vector<16x128xbf16>
      %c0_31 = arith.constant 0 : index
      %c0_32 = arith.constant 0 : index
      %55 = vector.load %arg11[%c0_31, %c0_32] : memref<16x128xbf16, #tpu.memory_space<vmem>>, vector<16x128xbf16>
      tpu.vector_store %arg11[%c0_31, %c0_32], %54 {strides = array<i32>} : memref<16x128xbf16, #tpu.memory_space<vmem>>, vector<16x128xbf16>,
      %cst_33 = arith.constant 0.000000e+00 : f32
      %56 = vector.broadcast %cst_33 : f32 to vector<16x128xf32>
      %c0_34 = arith.constant 0 : index
      %c0_35 = arith.constant 0 : index
      %57 = vector.load %arg12[%c0_34, %c0_35] : memref<16x128xf32, #tpu.memory_space<vmem>>, vector<16x128xf32>
      tpu.vector_store %arg12[%c0_34, %c0_35], %56 {strides = array<i32>} : memref<16x128xf32, #tpu.memory_space<vmem>>, vector<16x128xf32>,
    } else {
    }
    %c0 = arith.constant 0 : index
    %c0_1 = arith.constant 0 : index
    %3 = vector.load %arg11[%c0, %c0_1] : memref<16x128xbf16, #tpu.memory_space<vmem>>, vector<16x128xbf16>
    %c0_2 = arith.constant 0 : index
    %c0_3 = arith.constant 0 : index
    %4 = vector.load %arg6[%c0_2, %c0_3] : memref<128x256xbf16, #tpu.memory_space<vmem>>, vector<128x256xbf16>
    %cst = arith.constant dense<0.000000e+00> : vector<16x256xf32>
    %5 = tpu.matmul %3, %4, %cst {dimension_numbers = #tpu.dot_dimension_numbers<[1], [0], [0], [1], [0, 0, 1, 1], [], []>} : vector<16x128xbf16>, vector<128x256xbf16>, vector<16x256xf32> -> vector<16x256xf32>
    %c0_4 = arith.constant 0 : index
    %c0_5 = arith.constant 0 : index
    %6 = vector.load %arg7[%c0_4, %c0_5] : memref<1x256xf32, #tpu.memory_space<vmem>>, vector<1x256xf32>
    %7 = vector.broadcast %6 : vector<1x256xf32> to vector<16x256xf32>
    %8 = arith.addf %5, %7 : vector<16x256xf32>
    %cst_6 = arith.constant 5.000000e-01 : f32
    %9 = vector.broadcast %cst_6 : f32 to vector<16x256xf32>
    %10 = arith.mulf %9, %8 : vector<16x256xf32>
    %cst_7 = arith.constant 0.707106769 : f32
    %11 = vector.broadcast %cst_7 : f32 to vector<16x256xf32>
    %12 = arith.mulf %8, %11 : vector<16x256xf32>
    %13 = math.erf %12 : vector<16x256xf32>
    %cst_8 = arith.constant 1.000000e+00 : f32
    %14 = vector.broadcast %cst_8 : f32 to vector<16x256xf32>
    %15 = arith.addf %14, %13 : vector<16x256xf32>
    %16 = arith.mulf %10, %15 : vector<16x256xf32>
    %c0_9 = arith.constant 0 : index
    %c0_10 = arith.constant 0 : index
    %17 = vector.load %arg12[%c0_9, %c0_10] : memref<16x128xf32, #tpu.memory_space<vmem>>, vector<16x128xf32>
    %18 = arith.truncf %16 : vector<16x256xf32> to vector<16x256xbf16>
    %c0_11 = arith.constant 0 : index
    %c0_12 = arith.constant 0 : index
    %19 = vector.load %arg8[%c0_11, %c0_12] : memref<256x128xbf16, #tpu.memory_space<vmem>>, vector<256x128xbf16>
    %cst_13 = arith.constant dense<0.000000e+00> : vector<16x128xf32>
    %20 = tpu.matmul %18, %19, %cst_13 {dimension_numbers = #tpu.dot_dimension_numbers<[1], [0], [0], [1], [0, 0, 1, 1], [], []>} : vector<16x256xbf16>, vector<256x128xbf16>, vector<16x128xf32> -> vector<16x128xf32>
    %21 = arith.addf %17, %20 : vector<16x128xf32>
    %c0_14 = arith.constant 0 : index
    %c0_15 = arith.constant 0 : index
    %22 = vector.load %arg12[%c0_14, %c0_15] : memref<16x128xf32, #tpu.memory_space<vmem>>, vector<16x128xf32>
    tpu.vector_store %arg12[%c0_14, %c0_15], %21 {strides = array<i32>} : memref<16x128xf32, #tpu.memory_space<vmem>>, vector<16x128xf32>,
    %c0_i32_16 = arith.constant 0 : i32
    %23 = arith.cmpi eq, %arg1, %c0_i32_16 : i32
    %24 = arith.extui %23 : i1 to i32
    %c0_i32_17 = arith.constant 0 : i32
    %25 = arith.cmpi ne, %24, %c0_i32_17 : i32
    scf.if %25 {
      %c0_18 = arith.constant 0 : index
      %c0_19 = arith.constant 0 : index
      %26 = vector.load %arg2[%c0_18, %c0_19] : memref<16x128xf32, #tpu.memory_space<vmem>>, vector<16x128xf32>
      %c0_20 = arith.constant 0 : index
      %c0_21 = arith.constant 0 : index
      %27 = vector.load %arg3[%c0_20, %c0_21] : memref<16x128xbf16, #tpu.memory_space<vmem>>, vector<16x128xbf16>
      %28 = arith.extf %27 : vector<16x128xbf16> to vector<16x128xf32>
      %29 = arith.addf %26, %28 : vector<16x128xf32>
      %c0_22 = arith.constant 0 : index
      %c0_23 = arith.constant 0 : index
      %30 = vector.load %arg12[%c0_22, %c0_23] : memref<16x128xf32, #tpu.memory_space<vmem>>, vector<16x128xf32>
      %c0_24 = arith.constant 0 : index
      %c0_25 = arith.constant 0 : index
      %31 = vector.load %arg9[%c0_24, %c0_25] : memref<1x128xf32, #tpu.memory_space<vmem>>, vector<1x128xf32>
      %32 = vector.broadcast %31 : vector<1x128xf32> to vector<16x128xf32>
      %33 = arith.addf %30, %32 : vector<16x128xf32>
      %34 = arith.addf %33, %29 : vector<16x128xf32>
      %c0_26 = arith.constant 0 : index
      %c0_27 = arith.constant 0 : index
      %35 = vector.load %arg10[%c0_26, %c0_27] : memref<16x128xf32, #tpu.memory_space<vmem>>, vector<16x128xf32>
      tpu.vector_store %arg10[%c0_26, %c0_27], %34 {strides = array<i32>} : memref<16x128xf32, #tpu.memory_space<vmem>>, vector<16x128xf32>,
    } else {
    }
    return
  }
  func.func @transform_0(%arg0: i32, %arg1: i32) -> (i32, i32) {
    %c0_i32 = arith.constant 0 : i32
    %c0_i32_0 = arith.constant 0 : i32
    return %arg0, %c0_i32 : i32, i32
  }
  func.func @transform_1(%arg0: i32, %arg1: i32) -> (i32, i32) {
    %c0_i32 = arith.constant 0 : i32
    %c0_i32_0 = arith.constant 0 : i32
    return %arg0, %c0_i32 : i32, i32
  }
  func.func @transform_2(%arg0: i32, %arg1: i32) -> (i32, i32) {
    %c0_i32 = arith.constant 0 : i32
    %c0_i32_0 = arith.constant 0 : i32
    %c0_i32_1 = arith.constant 0 : i32
    return %c0_i32, %c0_i32_0 : i32, i32
  }
  func.func @transform_3(%arg0: i32, %arg1: i32) -> (i32, i32) {
    %c0_i32 = arith.constant 0 : i32
    %c0_i32_0 = arith.constant 0 : i32
    %c0_i32_1 = arith.constant 0 : i32
    return %c0_i32, %c0_i32_0 : i32, i32
  }
  func.func @transform_4(%arg0: i32, %arg1: i32) -> (i32, i32) {
    %c0_i32 = arith.constant 0 : i32
    %c0_i32_0 = arith.constant 0 : i32
    return %c0_i32, %arg1 : i32, i32
  }
  func.func @transform_5(%arg0: i32, %arg1: i32) -> (i32, i32) {
    %c0_i32 = arith.constant 0 : i32
    %c0_i32_0 = arith.constant 0 : i32
    return %c0_i32, %arg1 : i32, i32
  }
  func.func @transform_6(%arg0: i32, %arg1: i32) -> (i32, i32) {
    %c0_i32 = arith.constant 0 : i32
    %c0_i32_0 = arith.constant 0 : i32
    return %arg1, %c0_i32 : i32, i32
  }
  func.func @transform_7(%arg0: i32, %arg1: i32) -> (i32, i32) {
    %c0_i32 = arith.constant 0 : i32
    %c0_i32_0 = arith.constant 0 : i32
    %c0_i32_1 = arith.constant 0 : i32
    return %c0_i32, %c0_i32_0 : i32, i32
  }
  func.func @transform_8(%arg0: i32, %arg1: i32) -> (i32, i32) {
    %c0_i32 = arith.constant 0 : i32
    %c0_i32_0 = arith.constant 0 : i32
    return %arg0, %c0_i32 : i32, i32
  }
}

module attributes {stable_mosaic.version = 11 : i64} {
  func.func @_fused_linear_kernel(%arg0: i32, %arg1: i32, %arg2: memref<8x128xf32, #tpu.memory_space<vmem>>, %arg3: memref<1x128xf32, #tpu.memory_space<vmem>>, %arg4: memref<1x128xf32, #tpu.memory_space<vmem>>, %arg5: memref<128x10xbf16, #tpu.memory_space<vmem>>, %arg6: memref<1x10xf32, #tpu.memory_space<vmem>>, %arg7: memref<8x10xf32, #tpu.memory_space<vmem>>, %arg8: memref<8x128xbf16, #tpu.memory_space<vmem>>) attributes {dimension_semantics = [#tpu.dimension_semantics<parallel>, #tpu.dimension_semantics<arbitrary>], iteration_bounds = array<i64: 1, 1>, scalar_prefetch = 0 : i64, scratch_operands = 1 : i64, tpu.core_type = #tpu.core_type<tc>, window_params = [{transform_indices = @transform_0, window_bounds = array<i64: 8, 128>}, {pipeline_mode = #tpu.pipeline_mode<synchronous>, transform_indices = @transform_1, window_bounds = array<i64: 1, 128>}, {pipeline_mode = #tpu.pipeline_mode<synchronous>, transform_indices = @transform_2, window_bounds = array<i64: 1, 128>}, {transform_indices = @transform_3, window_bounds = array<i64: 128, 10>}, {transform_indices = @transform_4, window_bounds = array<i64: 1, 10>}, {transform_indices = @transform_5, window_bounds = array<i64: 8, 10>}]} {
    %c0_i32 = arith.constant 0 : i32
    %0 = arith.cmpi eq, %arg1, %c0_i32 : i32
    %1 = arith.extui %0 : i1 to i32
    %c0_i32_0 = arith.constant 0 : i32
    %2 = arith.cmpi ne, %1, %c0_i32_0 : i32
    scf.if %2 {
      %c0_8 = arith.constant 0 : index
      %c0_9 = arith.constant 0 : index
      %10 = vector.load %arg2[%c0_8, %c0_9] : memref<8x128xf32, #tpu.memory_space<vmem>>, vector<8x128xf32>
      %cst_10 = arith.constant dense<0.000000e+00> : vector<8xf32>
      %11 = vector.multi_reduction <add>, %10, %cst_10 [1] : vector<8x128xf32> to vector<8xf32>
      %12 = vector.shape_cast %11 : vector<8xf32> to vector<8x1xf32>
      %cst_11 = arith.constant 1.280000e+02 : f32
      %13 = vector.broadcast %cst_11 : f32 to vector<8x1xf32>
      %14 = arith.divf %12, %13 : vector<8x1xf32>
      %15 = vector.broadcast %14 : vector<8x1xf32> to vector<8x128xf32>
      %16 = arith.subf %10, %15 : vector<8x128xf32>
      %17 = arith.mulf %16, %16 : vector<8x128xf32>
      %cst_12 = arith.constant dense<0.000000e+00> : vector<8xf32>
      %18 = vector.multi_reduction <add>, %17, %cst_12 [1] : vector<8x128xf32> to vector<8xf32>
      %19 = vector.shape_cast %18 : vector<8xf32> to vector<8x1xf32>
      %cst_13 = arith.constant 1.280000e+02 : f32
      %20 = vector.broadcast %cst_13 : f32 to vector<8x1xf32>
      %21 = arith.divf %19, %20 : vector<8x1xf32>
      %22 = vector.broadcast %14 : vector<8x1xf32> to vector<8x128xf32>
      %23 = arith.subf %10, %22 : vector<8x128xf32>
      %cst_14 = arith.constant 9.99999974E-6 : f32
      %24 = vector.broadcast %cst_14 : f32 to vector<8x1xf32>
      %25 = arith.addf %21, %24 : vector<8x1xf32>
      %26 = math.rsqrt %25 : vector<8x1xf32>
      %27 = vector.broadcast %26 : vector<8x1xf32> to vector<8x128xf32>
      %28 = arith.mulf %23, %27 : vector<8x128xf32>
      %c0_15 = arith.constant 0 : index
      %c0_16 = arith.constant 0 : index
      %29 = vector.load %arg3[%c0_15, %c0_16] : memref<1x128xf32, #tpu.memory_space<vmem>>, vector<1x128xf32>
      %30 = vector.broadcast %29 : vector<1x128xf32> to vector<8x128xf32>
      %31 = arith.mulf %28, %30 : vector<8x128xf32>
      %c0_17 = arith.constant 0 : index
      %c0_18 = arith.constant 0 : index
      %32 = vector.load %arg4[%c0_17, %c0_18] : memref<1x128xf32, #tpu.memory_space<vmem>>, vector<1x128xf32>
      %33 = vector.broadcast %32 : vector<1x128xf32> to vector<8x128xf32>
      %34 = arith.addf %31, %33 : vector<8x128xf32>
      %35 = arith.truncf %34 : vector<8x128xf32> to vector<8x128xbf16>
      %c0_19 = arith.constant 0 : index
      %c0_20 = arith.constant 0 : index
      %36 = vector.load %arg8[%c0_19, %c0_20] : memref<8x128xbf16, #tpu.memory_space<vmem>>, vector<8x128xbf16>
      tpu.vector_store %arg8[%c0_19, %c0_20], %35 {strides = array<i32>} : memref<8x128xbf16, #tpu.memory_space<vmem>>, vector<8x128xbf16>,
    } else {
    }
    %c0 = arith.constant 0 : index
    %c0_1 = arith.constant 0 : index
    %3 = vector.load %arg8[%c0, %c0_1] : memref<8x128xbf16, #tpu.memory_space<vmem>>, vector<8x128xbf16>
    %c0_2 = arith.constant 0 : index
    %c0_3 = arith.constant 0 : index
    %4 = vector.load %arg5[%c0_2, %c0_3] : memref<128x10xbf16, #tpu.memory_space<vmem>>, vector<128x10xbf16>
    %cst = arith.constant dense<0.000000e+00> : vector<8x10xf32>
    %5 = tpu.matmul %3, %4, %cst {dimension_numbers = #tpu.dot_dimension_numbers<[1], [0], [0], [1], [0, 0, 1, 1], [], []>} : vector<8x128xbf16>, vector<128x10xbf16>, vector<8x10xf32> -> vector<8x10xf32>
    %c0_4 = arith.constant 0 : index
    %c0_5 = arith.constant 0 : index
    %6 = vector.load %arg6[%c0_4, %c0_5] : memref<1x10xf32, #tpu.memory_space<vmem>>, vector<1x10xf32>
    %7 = vector.broadcast %6 : vector<1x10xf32> to vector<8x10xf32>
    %8 = arith.addf %5, %7 : vector<8x10xf32>
    %c0_6 = arith.constant 0 : index
    %c0_7 = arith.constant 0 : index
    %9 = vector.load %arg7[%c0_6, %c0_7] : memref<8x10xf32, #tpu.memory_space<vmem>>, vector<8x10xf32>
    tpu.vector_store %arg7[%c0_6, %c0_7], %8 {strides = array<i32>} : memref<8x10xf32, #tpu.memory_space<vmem>>, vector<8x10xf32>,
    return
  }
  func.func @transform_0(%arg0: i32, %arg1: i32) -> (i32, i32) {
    %c0_i32 = arith.constant 0 : i32
    %c0_i32_0 = arith.constant 0 : i32
    return %arg0, %c0_i32 : i32, i32
  }
  func.func @transform_1(%arg0: i32, %arg1: i32) -> (i32, i32) {
    %c0_i32 = arith.constant 0 : i32
    %c0_i32_0 = arith.constant 0 : i32
    %c0_i32_1 = arith.constant 0 : i32
    return %c0_i32, %c0_i32_0 : i32, i32
  }
  func.func @transform_2(%arg0: i32, %arg1: i32) -> (i32, i32) {
    %c0_i32 = arith.constant 0 : i32
    %c0_i32_0 = arith.constant 0 : i32
    %c0_i32_1 = arith.constant 0 : i32
    return %c0_i32, %c0_i32_0 : i32, i32
  }
  func.func @transform_3(%arg0: i32, %arg1: i32) -> (i32, i32) {
    %c0_i32 = arith.constant 0 : i32
    %c0_i32_0 = arith.constant 0 : i32
    return %c0_i32, %arg1 : i32, i32
  }
  func.func @transform_4(%arg0: i32, %arg1: i32) -> (i32, i32) {
    %c0_i32 = arith.constant 0 : i32
    %c0_i32_0 = arith.constant 0 : i32
    return %c0_i32, %arg1 : i32, i32
  }
  func.func @transform_5(%arg0: i32, %arg1: i32) -> (i32, i32) {
    %c0_i32 = arith.constant 0 : i32
    return %arg0, %arg1 : i32, i32
  }
}

</mosaic_0001>

<bundles_post_ra>
// kernel: vit_forward.11
= control target key start
LH: loop header
LB: loop body
LE: loop exit
PB: predicated region body
PF: predicated region fallthrough
CT: control target
= control target key end

     0   :  { %s84_s0 = inlined_call_operand.vmem [shape: f32[8,128], index: 0, kind: input, shape index: {}]   ;;  %s85_s1 = inlined_call_operand.vmem [shape: f32[1,128], index: 1, kind: input, shape index: {}]   ;;  %s86_s2 = inlined_call_operand.vmem [shape: f32[1,128], index: 2, kind: input, shape index: {}]   ;;  %s87_s3 = inlined_call_operand.vmem [shape: f32[8,128], index: 3, kind: output, shape index: {}]  }
   0x1   :  { %v14_v0 = vld [vmem:[%s84_s0] sm:$0xff] }
   0x2   :  { %15 = vadd.xlane.f32.xlu0 %v14_v0  ;;  %v48_v9 = vld [vmem:[%s85_s1] ss:$0 sm:$0xff] }
   0x3   :  { %v49_v11 = vld [vmem:[%s86_s2] ss:$0 sm:$0xff] }
  0x8f   :  { %v16_v1 = vpop.xlane.xlu0 %15 }
  0x90   :  { %v18_v2 = vmul.f32 0.0078125, %v16_v1 }
  0x92   :  { %v19_v3 = vsub.f32 %v14_v0, %v18_v2 }
  0x94   :  { %v20_v4 = vmul.f32 %v19_v3, %v19_v3 }
  0x96   :  { %21 = vadd.xlane.f32.xlu0 %v20_v4 }
 0x123   :  { %v22_v5 = vpop.xlane.xlu0 %21 }
 0x124   :  { %v23_v6 = vmul.f32 0.0078125, %v22_v5 }
 0x126   :  { %v24_v7 = vadd.f32 1e-05, %v23_v6 }
 0x128   :  { %50 = vrsqrt.f32 %v24_v7 }
 0x132   :  { %v51_v8 = vpop.eup %50 }
 0x133   :  { %v26_v10 = vmul.f32 %v51_v8, %v19_v3 }
 0x135   :  { %v34_v12 = vmul.f32 %v48_v9, %v26_v10 }
 0x137   :  { %v42_v13 = vadd.f32 %v49_v11, %v34_v12 }
 0x139   :  { %43 = vst [vmem:[%s87_s3] sm:$0xff] %v42_v13 }

// kernel: vit_forward.10
= control target key start
LH: loop header
LB: loop body
LE: loop exit
PB: predicated region body
PF: predicated region fallthrough
CT: control target
= control target key end

     0   :  { %vm26_vm0 = vcmask 130048   ;;  %v143_v7 = vmov 0.0   ;;  %vm144_vm1 = vmmov 0   ;;  %vm58_vm2 = vcmask 125952   ;;  %s196_s0 = inlined_call_operand.vmem [shape: f32[8,16], index: 0, kind: input, shape index: {}]   ;;  %s197_s3 = inlined_call_operand.vmem [shape: bf16[16,128], index: 3, kind: input, shape index: {}]   ;;  %s198_s1 = inlined_call_operand.vmem [shape: f32[1,16], index: 1, kind: input, shape index: {}]   ;;  %s199_s2 = inlined_call_operand.vmem [shape: f32[1,16], index: 2, kind: input, shape index: {}]   ;;  %s200_s4 = inlined_call_operand.vmem [shape: f32[1,128], index: 4, kind: input, shape index: {}]   ;;  %s201_s5 = inlined_call_operand.vmem [shape: f32[8,128], index: 5, kind: output, shape index: {}]  }
   0x1   :  { %v25_v0 = vld [vmem:[%s196_s0] sm:$0xff]  ;;  %132 = vmatprep.subr.bf16.mxu0 %v143_v7  ;;  %134 = vmatprep.mubr.msk.bf16.mxu0 %vm144_vm1, %v143_v7 }
   0x2   :  { %v27_v1 = vsel %vm26_vm0, %v25_v0, 0.0  ;;  %v140_v8 = vld [vmem:[%s197_s3] sm:$0xff]  }
   0x3   :  { %28 = vadd.xlane.f32.xlu0 %v27_v1  ;;  %133 = vmatpush3.bf16.msra.mxu0 %v140_v8  ;;  %v125_v13 = vld [vmem:[%s198_s1] ss:$0 sm:$0xff] }
   0x4   :  { %v126_v15 = vld [vmem:[%s199_s2] ss:$0 sm:$0xff] }
   0x5   :  { %v127_v20 = vld [vmem:[%s200_s4] ss:$0 sm:$0xff] }
  0x90   :  { %v29_v2 = vpop.xlane.xlu0 %28 }
  0x91   :  { %v31_v3 = vmul.f32 0.0625, %v29_v2 }
  0x93   :  { %v32_v4 = vsub.f32 %v25_v0, %v31_v3 }
  0x95   :  { %v33_v5 = vmul.f32 %v32_v4, %v32_v4 }
  0x97   :  { %v34_v6 = vsel %vm26_vm0, %v33_v5, 0.0 }
  0x98   :  { %35 = vadd.xlane.f32.xlu0 %v34_v6 }
 0x125   :  { %v36_v9 = vpop.xlane.xlu0 %35 }
 0x126   :  { %v37_v10 = vmul.f32 0.0625, %v36_v9 }
 0x128   :  { %v38_v11 = vadd.f32 1e-05, %v37_v10 }
 0x12a   :  { %141 = vrsqrt.f32 %v38_v11 }
 0x134   :  { %v142_v12 = vpop.eup %141 }
 0x135   :  { %v40_v14 = vmul.f32 %v142_v12, %v32_v4 }
 0x137   :  { %v48_v16 = vmul.f32 %v125_v13, %v40_v14 }
 0x139   :  { %v56_v17 = vadd.f32 %v126_v15, %v48_v16 }
 0x13b   :  { %v57_v18 = vpack.c.bf16 %v56_v17, %v56_v17 }
 0x13d   :  { %59 = vst.msk [vmem:[#allocation2] sm:$0xf] %vm58_vm2, %v57_v18 }
 0x144   :  { %v60_v19 = vld [vmem:[#allocation2] sm:$0xf] }
 0x145   :  { %135 = vmatmul.mubr.msk.bf16.vlgmr.msra.gmra.mrb[0].mxu0 %vm26_vm0, %v60_v19 }
 0x218   :  { %v114_v21 = vpop.f32.mrb[0].mxu0 }
 0x219   :  { %v115_v22 = vadd.f32 %v127_v20, %v114_v21  ;;  %v136_v23 = vpop.f32.mrb[1].mxu0 }
 0x21a   :  { %v117_v24 = vpop.f32.mrb[2].mxu0 }
 0x21b   :  { %120 = vst [vmem:[%s201_s5] sm:$0xff] %v115_v22  ;;  %v137_v25 = vpop.f32.mrb[3].mxu0 }

// kernel: vit_forward.12
= control target key start
LH: loop header
LB: loop body
LE: loop exit
PB: predicated region body
PF: predicated region fallthrough
CT: control target
= control target key end

     0   :  { %s817_s15 = smov 0   ;;  %s819_s16 = smov 0   ;;  %s935_s0 = inlined_call_operand.vmem [shape: f32[16,128], index: 0, kind: input, shape index: {}]   ;;  %s936_s1 = inlined_call_operand.vmem [shape: f32[1,128], index: 1, kind: input, shape index: {}]   ;;  %s937_s2 = inlined_call_operand.vmem [shape: f32[1,128], index: 2, kind: input, shape index: {}]   ;;  %s938_s3 = inlined_call_operand.vmem [shape: bf16[128,384], index: 3, kind: input, shape index: {}]   ;;  %s939_s4 = inlined_call_operand.vmem [shape: bf16[16,384], index: 4, kind: output, shape index: {}]  }
   0x1   :  { %s821_s17 = smov 0   ;;  %s823_s18 = smov 0  }
   0x2   :  { %s825_s19 = smov 0  }
   0x3 LB: > { %s23_s20 = sadd.s32 1, %s784_s18  ;;  %s633_s21 = sadd.s32 4294967295, %s788_s19   ;;  %s788_s19 = sphi %s825_s19, %s14_s19   ;;  %s784_s18 = sphi %s823_s18, %s944_s18   ;;  %s780_s17 = sphi %s821_s17, %s943_s17   ;;  %s776_s16 = sphi %s819_s16, %s942_s16   ;;  %s772_s15 = sphi %s817_s15, %s941_s15  }
   0x4   : > { %p24_p0 = scmp.ge.s32.totalorder %s23_s20, 3  ;;  %p108_p1 = scmp.ne.s32.totalorder %s776_s16, %s772_s15 }
   0x5   : > { %p109_p2 = scmp.eq.s32.totalorder %s788_s19, 0  ;;  %p140_p4 = scmp.eq.s32.totalorder %s633_s21, 2 }
   0x6   : > { %s946_s20 = smov (%p24_p0, %s23_s20), 0  ;;  %s101_s23 = sadd.s32 1, %s776_s16 }
   0x7   : > { %p110_p3 = por %p109_p2, %p108_p1  ;;  %s98_s22 = ssub.s32 %s784_s18, %s946_s20 }
   0x8   : > { %p99_p5 = scmp.eq.s32.totalorder %s98_s22, 0  ;;  %p852_p6 = por %p140_p4, %p108_p1 }
   0x9   : > { %p637_p7 = scmp.ge.s32.totalorder %s788_s19, 3 }
   0xa   : > { %s857_s25 = scalar_select %p99_p5, %s776_s16, %s101_s23  }
   0xb   : > { %177 = sbr.rel (%p637_p7) target bundleno = 32 (0x20), region = 28 }
  0x12   : > { %180 = sbr.rel (!%p110_p3) target bundleno = 32 (0x20), region = 32  ;;  %s182_s26 = sand.u32 (%p110_p3), 1, %s776_s16  }
  0x13   : > { %s639_s27 = sshll.u32 (%p110_p3), %s784_s18, 2  ;;  %s638_s28 = sshll.u32 (%p110_p3), %s182_s26, 6 }
  0x14   : > { %s865_s5 = scalar_lea.vmem (%p110_p3), %s938_s3, %s639_s27  ;;  %s184_s6 = scalar_lea.vmem (%p110_p3), [#allocation3], %s638_s28 }
  0x15   : > { %v202_v0 = vld [vmem:[%s865_s5] sm:$0xf] (%p110_p3)  ;;  %v204_v1 = vld [vmem:[%s865_s5 + $0xc] sm:$0xf] (%p110_p3)  ;;  %v206_v2 = vld [vmem:[%s865_s5 + $0x18] sm:$0xf] (%p110_p3) }
  0x16   : > { %203 = vst [vmem:[%s184_s6] sm:$0xf] (%p110_p3), %v202_v0  ;;  %205 = vst [vmem:[%s184_s6 + $0x4] sm:$0xf] (%p110_p3), %v204_v1  ;;  %v208_v3 = vld [vmem:[%s865_s5 + $0x24] sm:$0xf] (%p110_p3) }
  0x17   : > { %v210_v4 = vld [vmem:[%s865_s5 + $0x30] sm:$0xf] (%p110_p3)  ;;  %207 = vst [vmem:[%s184_s6 + $0x8] sm:$0xf] (%p110_p3), %v206_v2  ;;  %209 = vst [vmem:[%s184_s6 + $0xc] sm:$0xf] (%p110_p3), %v208_v3 }
  0x18   : > { %211 = vst [vmem:[%s184_s6 + $0x10] sm:$0xf] (%p110_p3), %v210_v4  ;;  %v212_v5 = vld [vmem:[%s865_s5 + $0x3c] sm:$0xf] (%p110_p3)  ;;  %v214_v6 = vld [vmem:[%s865_s5 + $0x48] sm:$0xf] (%p110_p3) }
  0x19   : > { %v216_v7 = vld [vmem:[%s865_s5 + $0x54] sm:$0xf]  ;;  %213 = vst [vmem:[%s184_s6 + $0x14] sm:$0xf] %v212_v5  ;;  %215 = vst [vmem:[%s184_s6 + $0x18] sm:$0xf] %v214_v6 }
  0x1a   : > { %217 = vst [vmem:[%s184_s6 + $0x1c] sm:$0xf] %v216_v7  ;;  %v218_v8 = vld [vmem:[%s865_s5 + $0x60] sm:$0xf]  ;;  %v220_v9 = vld [vmem:[%s865_s5 + $0x6c] sm:$0xf] }
  0x1b   : > { %v222_v10 = vld [vmem:[%s865_s5 + $0x78] sm:$0xf]  ;;  %219 = vst [vmem:[%s184_s6 + $0x20] sm:$0xf] %v218_v8  ;;  %221 = vst [vmem:[%s184_s6 + $0x24] sm:$0xf] %v220_v9 }
  0x1c   : > { %223 = vst [vmem:[%s184_s6 + $0x28] sm:$0xf] %v222_v10  ;;  %v224_v11 = vld [vmem:[%s865_s5 + $0x84] sm:$0xf]  ;;  %v226_v12 = vld [vmem:[%s865_s5 + $0x90] sm:$0xf] }
  0x1d   : > { %v228_v13 = vld [vmem:[%s865_s5 + $0x9c] sm:$0xf]  ;;  %225 = vst [vmem:[%s184_s6 + $0x2c] sm:$0xf] %v224_v11  ;;  %227 = vst [vmem:[%s184_s6 + $0x30] sm:$0xf] %v226_v12 }
  0x1e   : > { %229 = vst [vmem:[%s184_s6 + $0x34] sm:$0xf] %v228_v13  ;;  %v230_v14 = vld [vmem:[%s865_s5 + $0xa8] sm:$0xf]  ;;  %v232_v15 = vld [vmem:[%s865_s5 + $0xb4] sm:$0xf] }
  0x1f   : > { %231 = vst [vmem:[%s184_s6 + $0x38] sm:$0xf] %v230_v14  ;;  %233 = vst [vmem:[%s184_s6 + $0x3c] sm:$0xf] %v232_v15 }
  0x20 PF: > { %p640_p8 = scmp.ge.s32.totalorder %s788_s19, 1  ;;  %p287_p9 = scmp.lt.s32.totalorder %s788_s19, 4 }
  0x22   : > { %p288_p10 = pnand %p640_p8, %p287_p9 }
  0x23   : > { %s294_s7 = sand.u32 (!%p288_p10), 1, %s772_s15   ;;  %p643_p11 = scmp.ne.s32.totalorder (!%p288_p10), %s780_s17, 0 }
  0x24   : > { %291 = sbr.rel (%p288_p10) target bundleno = 620 (0x26c), region = 73  ;;  %s641_s8 = sshll.u32 (!%p288_p10), %s294_s7, 6 }
  0x25   : > { %s642_s9 = sshll.u32 (!%p288_p10), %s294_s7, 3  ;;  %s886_s10 = scalar_lea.vmem (!%p288_p10), [#allocation3], %s641_s8 }
  0x26   : > { %s888_s11 = scalar_lea.vmem (!%p288_p10), [#allocation4], %s642_s9 }
  0x2b   : > { %334 = sbr.rel (%p643_p11) target bundleno = 362 (0x16a), region = 81  ;;  %v335_v16 = vld [vmem:[%s935_s0] sm:$0xff] (!%p643_p11)  ;;  %v336_v17 = vld [vmem:[%s935_s0 + $0x8] sm:$0xff] (!%p643_p11) }
  0x2c   : > { %337 = vadd.xlane.f32.xlu0 (!%p643_p11), %v335_v16  ;;  %v644_v34 = vld [vmem:[%s936_s1] ss:$0 sm:$0xff] (!%p643_p11) }
  0x2d   : > { %v645_v38 = vld [vmem:[%s937_s2] ss:$0 sm:$0xff] (!%p643_p11) }
  0x30   : > { %339 = vadd.xlane.f32.xlu0 (!%p643_p11), %v336_v17 }
  0xb9   : > { %v338_v18 = vpop.xlane.xlu0 %337 }
  0xba   : > { %v342_v19 = vmul.f32 0.0078125, %v338_v18 }
  0xbc   : > { %v344_v20 = vsub.f32 %v335_v16, %v342_v19 }
  0xbd   : > { %v340_v21 = vpop.xlane.xlu0 %339 }
  0xbe   : > { %v343_v22 = vmul.f32 0.0078125, %v340_v21  ;;  %v346_v23 = vmul.f32 %v344_v20, %v344_v20 }
  0xc0   : > { %v345_v24 = vsub.f32 %v336_v17, %v343_v22  ;;  %348 = vadd.xlane.f32.xlu1 %v346_v23 }
  0xc2   : > { %v347_v25 = vmul.f32 %v345_v24, %v345_v24 }
  0xc4   : > { %350 = vadd.xlane.f32.xlu1 %v347_v25 }
 0x14d   : > { %v349_v26 = vpop.xlane.xlu1 %348 }
 0x14e   : > { %v352_v27 = vmul.f32 0.0078125, %v349_v26 }
 0x150   : > { %v354_v28 = vadd.f32 1e-05, %v352_v27 }
 0x151   : > { %v351_v29 = vpop.xlane.xlu1 %350 }
 0x152   : > { %738 = vrsqrt.f32 %v354_v28  ;;  %v353_v30 = vmul.f32 0.0078125, %v351_v29 }
 0x154   : > { %v355_v31 = vadd.f32 1e-05, %v353_v30 }
 0x156   : > { %740 = vrsqrt.f32 %v355_v31 }
 0x15c   : > { %v739_v32 = vpop.eup %738 }
 0x15d   : > { %v358_v33 = vmul.f32 %v739_v32, %v344_v20 }
 0x15f   : > { %v367_v36 = vmul.f32 %v644_v34, %v358_v33 }
 0x160   : > { %v741_v35 = vpop.eup %740 }
 0x161   : > { %v359_v37 = vmul.f32 %v741_v35, %v345_v24  ;;  %v376_v40 = vadd.f32 %v645_v38, %v367_v36 }
 0x163   : > { %v368_v39 = vmul.f32 %v644_v34, %v359_v37 }
 0x165   : > { %v377_v41 = vadd.f32 %v645_v38, %v368_v39 }
 0x167   : > { %v378_v42 = vpack.c.bf16 %v377_v41, %v376_v40 }
 0x169   : > { %379 = vst [vmem:[#allocation2] sm:$0xff] %v378_v42 }
 0x16a PF: > { %v742_v43 = vld [vmem:[%s886_s10] sm:$0xff]   ;;  %v790_v44 = vmov 0.0   ;;  %v743_v45 = vld [vmem:[%s886_s10 + $0x8] sm:$0xff]   ;;  %vm791_vm0 = vmmov 0   ;;  %v744_v46 = vld [vmem:[%s886_s10 + $0x10] sm:$0xff]   ;;  %s657_s27 = sshll.u32 (%p852_p6), %s780_s17, 2 }
 0x16b   : > { %676 = vmatprep.subr.bf16.mxu0 %v790_v44  ;;  %692 = vmatprep.mubr.msk.bf16.mxu0 %vm791_vm0, %v790_v44  ;;  %v745_v47 = vld [vmem:[%s886_s10 + $0x18] sm:$0xff]   ;;  %v746_v48 = vld [vmem:[%s886_s10 + $0x20] sm:$0xff]   ;;  %v747_v49 = vld [vmem:[%s886_s10 + $0x28] sm:$0xff]   ;;  %s507_s30 = scalar_lea.vmem (%p852_p6), %s939_s4, %s657_s27 }
 0x16c   : > { %677 = vmatpush3.bf16.msra.mxu0 %v742_v43  ;;  %v748_v50 = vld [vmem:[%s886_s10 + $0x30] sm:$0xff]   ;;  %v749_v51 = vld [vmem:[%s886_s10 + $0x38] sm:$0xff]  }
 0x16d   : > { %678 = vmatprep.subr.bf16.mxu0 %v790_v44 }
 0x170   : > { %679 = vmatpush3.bf16.msra.mxu0 %v743_v45  ;;  %v380_v52 = vld [vmem:[#allocation2] sm:$0xff] }
 0x171   : > { %680 = vmatprep.subr.bf16.mxu0 %v790_v44 }
 0x174   : > { %681 = vmatpush3.bf16.msra.mxu0 %v744_v46 }
 0x175   : > { %682 = vmatprep.subr.bf16.mxu0 %v790_v44 }
 0x178   : > { %683 = vmatpush3.bf16.msra.mxu0 %v745_v47 }
 0x179   : > { %684 = vmatprep.subr.bf16.mxu0 %v790_v44 }
 0x17c   : > { %685 = vmatpush3.bf16.msra.mxu0 %v746_v48 }
 0x17d   : > { %686 = vmatprep.subr.bf16.mxu0 %v790_v44 }
 0x180   : > { %687 = vmatpush3.bf16.msra.mxu0 %v747_v49 }
 0x181   : > { %688 = vmatprep.subr.bf16.mxu0 %v790_v44 }
 0x184   : > { %689 = vmatpush3.bf16.msra.mxu0 %v748_v50 }
 0x185   : > { %690 = vmatprep.subr.bf16.mxu0 %v790_v44 }
 0x188   : > { %691 = vmatpush3.bf16.msra.mxu0 %v749_v51 }
 0x18b   : > { %693 = vmatmul.mubr.bf16.vlgmr.msra.gmra.mrb[0].mxu0 %v380_v52 }
 0x25d   : > { %502 = sbr.rel (!%p852_p6) target bundleno = 620 (0x26c), region = 85 }
 0x25e   : > { %v479_v53 = vpop.f32.mrb[0].mxu0 }
 0x25f   : > { %v694_v54 = vpop.f32.mrb[1].mxu0 }
 0x260   : > { %v482_v55 = vpop.f32.mrb[2].mxu0 }
 0x261   : > { %v665_v56 = vpack.c.bf16 %v482_v55, %v479_v53  ;;  %v695_v57 = vpop.f32.mrb[3].mxu0 }
 0x263   : > { %666 = vst [vmem:[%s888_s11] sm:$0xff] %v665_v56  }
 0x26a   : > { %v523_v58 = vld [vmem:[%s888_s11] sm:$0xf]  ;;  %v525_v59 = vld [vmem:[%s888_s11 + $0x4] sm:$0xf] }
 0x26b   : > { %524 = vst [vmem:[%s507_s30] sm:$0xf] %v523_v58  ;;  %526 = vst [vmem:[%s507_s30 + $0xc] sm:$0xf] %v525_v59 }
 0x26c PF: > { %s14_s19 = sadd.s32 1, %s788_s19   ;;  %s941_s15 = smov %s776_s16 }
 0x26d   : > { %p11_p12 = scmp.ge.s32.totalorder %s14_s19, 5   ;;  %s942_s16 = smov %s857_s25 }
 0x26e   : > { %s943_s17 = smov %s784_s18  ;;  %s944_s18 = smov %s946_s20 }
 0x26f   :  { %13 = sbr.rel (!%p11_p12) target bundleno = 3 (0x3), region = 160 }

// kernel: vit_forward.13
= control target key start
LH: loop header
LB: loop body
LE: loop exit
PB: predicated region body
PF: predicated region fallthrough
CT: control target
= control target key end

     0   :  { %s1149_s12 = smov 0   ;;  %s1294_s0 = inlined_call_operand.vmem [shape: bf16[2,5,384], index: 0, kind: input, shape index: {}]   ;;  %s1295_s1 = inlined_call_operand.vmem [shape: bf16[128,128], index: 1, kind: input, shape index: {}]   ;;  %s1296_s2 = inlined_call_operand.vmem [shape: f32[1,128], index: 2, kind: input, shape index: {}]   ;;  %s1297_s3 = inlined_call_operand.vmem [shape: bf16[2,5,128], index: 3, kind: output, shape index: {}]  }
   0x1 LB: > { %s934_s13 = sadd.s32 4294967295, %s1121_s12   ;;  %p938_p0 = scmp.ge.s32.totalorder %s1121_s12, 1  ;;  %s1121_s12 = sphi %s1149_s12, %s13_s12  }
   0x2   : > { %p137_p1 = scmp.lt.s32.totalorder %s1121_s12, 3 }
   0x4   : > { %p138_p2 = pnand %p938_p0, %p137_p1 }
   0x5   : > { %p160_p3 = scmp.lt.s32.totalorder (!%p138_p2), %s934_s13, 1  ;;  %v1123_v0 = vmov (!%p138_p2), 0.0   ;;  %vm1124_vm0 = vmmov (!%p138_p2), 0   ;;  %vm176_vm1 = vcmask (!%p138_p2), 261120   ;;  %vm223_vm2 = vcmask (!%p138_p2), 36864   ;;  %s1125_s18 = smov (!%p138_p2), 96  }
   0x6   : > { %141 = sbr.rel (%p138_p2) target bundleno = 2810 (0xafa), region = 32  ;;  %994 = vmatprep.subr.bf16.mxu0 (!%p138_p2), %v1123_v0  ;;  %996 = vmatprep.mubr.msk.bf16.mxu0 (!%p138_p2), %vm1124_vm0, %v1123_v0  ;;  %vm240_vm3 = vcmask (!%p138_p2), 1041408   ;;  %vm241_vm4 = vcmask (!%p138_p2), 1042432   ;;  %v1126_v19 = vmov (!%p138_p2), 65535   ;;  %vm236_vm5 = vcmask (!%p138_p2), 39936   ;;  %v1093_v47 = vld [vmem:[%s1295_s1 + $0x10] sm:$0xff] (!%p138_p2)  }
   0x7   : > { %1000 = vmatprep.subr.bf16.mxu1 (!%p138_p2), %v1123_v0  ;;  %1002 = vmatprep.mubr.msk.bf16.mxu1 (!%p138_p2), %vm1124_vm0, %v1123_v0  ;;  %v242_v20 = vsel (!%p138_p2), %vm240_vm3, 4294967295, %v1126_v19  ;;  %s1127_s21 = smov (!%p138_p2), 64   ;;  %v1094_v48 = vld [vmem:[%s1295_s1 + $0x18] sm:$0xff] (!%p138_p2)   ;;  %v1091_v52 = vld [vmem:[%s1295_s1] sm:$0xff] (!%p138_p2)   ;;  %v1092_v54 = vld [vmem:[%s1295_s1 + $0x8] sm:$0xff] (!%p138_p2)   ;;  %s1128_s28 = smov (!%p138_p2), 32  }
   0x8   : > { %v1186_v21 = vsel (!%p138_p2), %vm241_vm4, %v242_v20, 0  ;;  %vm876_vm6 = vsmask.f32 (!%p138_p2), 2304 }
   0x9   : > { %vm877_vm7 = vmand (!%p138_p2), %vm241_vm4, %vm876_vm6 }
   0xd   : > { %s1299_s13 = smov (!%p160_p3, %s934_s13), 1 }
   0xe   : > { %s1074_s14 = smul.u32 12, %s1299_s13  ;;  %s940_s10 = sshll.u32 %s1299_s13, 2 }
  0x10   : > { %s164_s17 = scalar_lea.vmem %s1294_s0, %s1074_s14 }
  0x11   : > { %v170_v1 = vld [vmem:[%s164_s17] sm:$0x7]  ;;  %v174_v2 = vld [vmem:[%s164_s17 + $0x4] sm:$0x7]  ;;  %v175_v18 = vld [vmem:[%s164_s17 + $0x8] sm:$0x7]  ;;  %s168_s17 = scalar_lea.vmem %s1297_s3, %s940_s10 }
  0x12   : > { %v171_v3 = vunpack.c.l.bf16 %v170_v1  ;;  %v181_v4 = vsel %vm176_vm1, %v174_v2, 0  ;;  %v1178_v12 = vcombine.low %v174_v2, %v174_v2  ;;  %v245_v22 = vand.u32 %v1186_v21, %v175_v18 }
  0x13   : > { %995 = vmatpush3.bf16.xpose.msra.mxu0 %v181_v4  ;;  %v1199_v39 = vcombine.low %v175_v18, %v175_v18 }
  0x14   : > { %v172_v5 = vmul.f32 0.17677669, %v171_v3  ;;  %1012 = vmatprep.subr.bf16.mxu0 %v1123_v0  ;;  %298 = vrot.lane.b32.xlu1 %v1178_v12, %s1125_s18 }
  0x15   : > { %1001 = vmatpush3.bf16.msra.mxu1 %v245_v22 }
  0x16   : > { %v1171_v6 = vpack.c.bf16 %v172_v5, %v172_v5  ;;  %1006 = vmatprep.subr.bf16.mxu1 %v1123_v0 }
  0x18   : > { %293 = vrot.lane.b32.xlu1 %v1171_v6, %s1125_s18 }
  0x1a   : > { %997 = vmatmul.mubr.msk.bf16.vlgmr.msra.gmra.mrb[0].mxu0 %vm176_vm1, %v1171_v6 }
  0x1b   : > { %1014 = vmatprep.mubr.msk.bf16.mxu0 %vm1124_vm0, %v1123_v0 }
  0x86   : > { %v299_v25 = vpop.permute.xlu1 %298 }
  0x87   : > { %v304_v27 = vsel %vm176_vm1, %v299_v25, 0  ;;  %v1095_v25 = vld [vmem:[%s1295_s1 + $0x20] sm:$0xff]  }
  0x8a   : > { %v294_v29 = vpop.permute.xlu1 %293 }
  0xed   : > { %v217_v7 = vpop.f32.mrb[0].mxu0 }
  0xee   : > { %v998_v8 = vpop.f32.mrb[1].mxu0  ;;  %v224_v9 = vsel %vm223_vm2, %v217_v7, -inf }
  0xef   : > { %225 = vmax.xlane.f32.xlu0 %v224_v9  ;;  %v220_v10 = vpop.f32.mrb[2].mxu0 }
  0xf0   : > { %v999_v11 = vpop.f32.mrb[3].mxu0 }
 0x17c   : > { %v226_v13 = vpop.xlane.xlu0 %225 }
 0x17d   : > { %v227_v14 = vsub.f32 %v217_v7, %v226_v13 }
 0x17f   : > { %v228_v15 = vmul.f32 1.442695, %v227_v14 }
 0x181   : > { %1099 = vpow2.f32 %v228_v15 }
 0x18b   : > { %v1100_v16 = vpop.eup %1099 }
 0x18c   : > { %v230_v17 = vsel %vm223_vm2, %v1100_v16, 0.0 }
 0x18d   : > { %231 = vadd.xlane.f32.xlu0 %v230_v17 }
 0x21a   : > { %v232_v23 = vpop.xlane.xlu0 %231 }
 0x21b   : > { %1101 = vrcp.f32 %v232_v23 }
 0x225   : > { %v1102_v24 = vpop.eup %1101 }
 0x226   : > { %v234_v26 = vmul.f32 %v1102_v24, %v1100_v16 }
 0x228   : > { %v235_v28 = vpack.c.bf16 %v234_v26, %v234_v26 }
 0x22a   : > { %1003 = vmatmul.mubr.msk.bf16.vlgmr.msra.gmra.mrb[0].mxu1 %vm236_vm5, %v235_v28 }
 0x22b   : > { %1007 = vmatpush3.bf16.xpose.msra.mxu1 %v304_v27  ;;  %1008 = vmatprep.mubr.msk.bf16.mxu1 %vm1124_vm0, %v1123_v0 }
 0x22c   : > { %1018 = vmatprep.subr.bf16.mxu1 %v1123_v0 }
 0x232   : > { %1009 = vmatmul.mubr.msk.bf16.vlgmr.msra.gmra.mrb[4].mxu1 %vm176_vm1, %v294_v29 }
 0x233   : > { %1022 = vmatprep.mubr.msk.bf16.mxu1 %vm1124_vm0, %v1123_v0  ;;  %1019 = vmatpush3.bf16.msra.mxu1 %v1093_v47 }
 0x234   : > { %1020 = vmatprep.subr.bf16.mxu1 %v1123_v0 }
 0x237   : > { %1021 = vmatpush3.bf16.msra.mxu1 %v1094_v48 }
 0x238   : > { %1034 = vmatprep.subr.bf16.mxu1 %v1123_v0 }
 0x2fd   : > { %v281_v30 = vpop.f32.mrb[0].mxu1 }
 0x2fe   : > { %v1004_v31 = vpop.f32.mrb[1].mxu1  ;;  %v287_v55 = vpack.c.bf16 %v281_v30, %v281_v30 }
 0x2ff   : > { %v284_v32 = vpop.f32.mrb[2].mxu1 }
 0x300   : > { %v1005_v33 = vpop.f32.mrb[3].mxu1 }
 0x305   : > { %v340_v34 = vpop.f32.mrb[4].mxu1 }
 0x306   : > { %v1010_v35 = vpop.f32.mrb[5].mxu1  ;;  %v346_v36 = vsel %vm223_vm2, %v340_v34, -inf }
 0x307   : > { %347 = vmax.xlane.f32.xlu0 %v346_v36  ;;  %v343_v37 = vpop.f32.mrb[6].mxu1 }
 0x308   : > { %v1011_v38 = vpop.f32.mrb[7].mxu1 }
 0x31d   : > { %361 = vrot.lane.b32.xlu0 %v1199_v39, %s1125_s18 }
 0x321   : > { %526 = vrot.lane.b32.xlu0 %v1178_v12, %s1127_s21 }
 0x325   : > { %524 = vrot.lane.b32.xlu0 %v1171_v6, %s1127_s21 }
 0x394   : > { %v348_v40 = vpop.xlane.xlu0 %347 }
 0x395   : > { %v349_v41 = vsub.f32 %v340_v34, %v348_v40 }
 0x397   : > { %v350_v42 = vmul.f32 1.442695, %v349_v41 }
 0x398   : > { %v362_v45 = vpop.permute.xlu0 %361 }
 0x399   : > { %1103 = vpow2.f32 %v350_v42  ;;  %v367_v46 = vand.u32 %v362_v45, %v1186_v21 }
 0x39b   : > { %1013 = vmatpush3.bf16.msra.mxu0 %v367_v46 }
 0x39c   : > { %1026 = vmatprep.subr.bf16.mxu0 %v1123_v0  ;;  %v527_v56 = vpop.permute.xlu0 %526 }
 0x39d   : > { %v532_v59 = vsel %vm176_vm1, %v527_v56, 0 }
 0x3a0   : > { %v525_v1 = vpop.permute.xlu0 %524 }
 0x3a3   : > { %v1104_v43 = vpop.eup %1103 }
 0x3a4   : > { %v352_v44 = vsel %vm223_vm2, %v1104_v43, 0.0 }
 0x3a5   : > { %353 = vadd.xlane.f32.xlu1 %v352_v44 }
 0x3b6   : > { %586 = vrot.lane.b32.xlu1 %v1199_v39, %s1127_s21 }
 0x432   : > { %v354_v49 = vpop.xlane.xlu1 %353 }
 0x433   : > { %1105 = vrcp.f32 %v354_v49 }
 0x436   : > { %v587_v17 = vpop.permute.xlu1 %586 }
 0x437   : > { %v592_v18 = vand.u32 %v587_v17, %v1186_v21 }
 0x43d   : > { %v1106_v50 = vpop.eup %1105 }
 0x43e   : > { %v356_v51 = vmul.f32 %v1106_v50, %v1104_v43  ;;  %v1097_v50 = vld [vmem:[%s1295_s1 + $0x30] sm:$0xff]  }
 0x440   : > { %v357_v53 = vpack.c.bf16 %v356_v51, %v356_v51 }
 0x442   : > { %1015 = vmatmul.mubr.msk.bf16.vlgmr.msra.gmra.mrb[4].mxu0 %vm236_vm5, %v357_v53 }
 0x443   : > { %1027 = vmatpush3.bf16.msra.mxu0 %v1091_v52  ;;  %1030 = vmatprep.mubr.msk.bf16.mxu0 %vm1124_vm0, %v1123_v0 }
 0x444   : > { %1028 = vmatprep.subr.bf16.mxu0 %v1123_v0 }
 0x447   : > { %1029 = vmatpush3.bf16.msra.mxu0 %v1092_v54 }
 0x448   : > { %1040 = vmatprep.subr.bf16.mxu0 %v1123_v0 }
 0x44a   : > { %1031 = vmatmul.mubr.msk.bf16.vlgmr.msra.gmra.mrb[8].mxu0 %vm176_vm1, %v287_v55 }
 0x44b   : > { %1042 = vmatprep.mubr.msk.bf16.mxu0 %vm1124_vm0, %v1123_v0  ;;  %1041 = vmatpush3.bf16.msra.mxu0 %v592_v18 }
 0x44c   : > { %1054 = vmatprep.subr.bf16.mxu0 %v1123_v0 }
 0x515   : > { %v403_v57 = vpop.f32.mrb[4].mxu0 }
 0x516   : > { %v409_v58 = vpack.c.bf16 %v403_v57, %v403_v57  ;;  %v1016_v60 = vpop.f32.mrb[5].mxu0 }
 0x517   : > { %v406_v61 = vpop.f32.mrb[6].mxu0 }
 0x518   : > { %v1017_v62 = vpop.f32.mrb[7].mxu0  ;;  %1023 = vmatmul.mubr.msk.bf16.vlgmr.msra.gmra.mrb[8].mxu1 %vm176_vm1, %v409_v58 }
 0x519   : > { %1035 = vmatpush3.bf16.xpose.msra.mxu1 %v532_v59  ;;  %1036 = vmatprep.mubr.msk.bf16.mxu1 %vm1124_vm0, %v1123_v0 }
 0x51a   : > { %1046 = vmatprep.subr.bf16.mxu1 %v1123_v0 }
 0x51d   : > { %v518_v63 = vpop.f32.mrb[8].mxu0 }
 0x51e   : > { %v1032_v2 = vpop.f32.mrb[9].mxu0 }
 0x51f   : > { %v521_v3 = vpop.f32.mrb[10].mxu0 }
 0x520   : > { %v1033_v4 = vpop.f32.mrb[11].mxu0  ;;  %1037 = vmatmul.mubr.msk.bf16.vlgmr.msra.gmra.mrb[12].mxu1 %vm176_vm1, %v525_v1  ;;  %v963_v1 = vld [vmem:[%s1296_s2] ss:$0 sm:$0xff] }
 0x521   : > { %1050 = vmatprep.mubr.msk.bf16.mxu1 %vm1124_vm0, %v1123_v0  ;;  %1047 = vmatpush3.bf16.msra.mxu1 %v1095_v25 }
 0x522   : > { %1048 = vmatprep.subr.bf16.mxu1 %v1123_v0 }
 0x5eb   : > { %v463_v5 = vpop.f32.mrb[8].mxu1 }
 0x5ec   : > { %v1239_v7 = vadd.f32 %v518_v63, %v463_v5  ;;  %v1024_v8 = vpop.f32.mrb[9].mxu1 }
 0x5ed   : > { %v466_v9 = vpop.f32.mrb[10].mxu1  ;;  %v878_v8 = vld [vmem:[%s168_s17] sm:$0x7] }
 0x5ee   : > { %v1025_v10 = vpop.f32.mrb[11].mxu1 }
 0x5f3   : > { %v568_v11 = vpop.f32.mrb[12].mxu1 }
 0x5f4   : > { %v1038_v13 = vpop.f32.mrb[13].mxu1  ;;  %v574_v14 = vsel %vm223_vm2, %v568_v11, -inf }
 0x5f5   : > { %575 = vmax.xlane.f32.xlu0 %v574_v14  ;;  %v571_v15 = vpop.f32.mrb[14].mxu1 }
 0x5f6   : > { %v1039_v16 = vpop.f32.mrb[15].mxu1 }
 0x682   : > { %v576_v19 = vpop.xlane.xlu0 %575 }
 0x683   : > { %v577_v20 = vsub.f32 %v568_v11, %v576_v19 }
 0x685   : > { %v578_v22 = vmul.f32 1.442695, %v577_v20 }
 0x687   : > { %1107 = vpow2.f32 %v578_v22 }
 0x691   : > { %v1108_v23 = vpop.eup %1107 }
 0x692   : > { %v580_v24 = vsel %vm223_vm2, %v1108_v23, 0.0 }
 0x693   : > { %581 = vadd.xlane.f32.xlu1 %v580_v24 }
 0x6a4   : > { %697 = vrot.lane.b32.xlu1 %v1178_v12, %s1128_s28  ;;  %v1096_v12 = vld [vmem:[%s1295_s1 + $0x28] sm:$0xff]  }
 0x6a5   : > { %1049 = vmatpush3.bf16.msra.mxu1 %v1096_v12 }
 0x6a6   : > { %1060 = vmatprep.subr.bf16.mxu1 %v1123_v0 }
 0x6a8   : > { %695 = vrot.lane.b32.xlu1 %v1171_v6, %s1128_s28 }
 0x720   : > { %v582_v26 = vpop.xlane.xlu1 %581 }
 0x721   : > { %1109 = vrcp.f32 %v582_v26 }
 0x724   : > { %v698_v28 = vpop.permute.xlu1 %697 }
 0x725   : > { %v703_v30 = vsel %vm176_vm1, %v698_v28, 0 }
 0x728   : > { %v696_v6 = vpop.permute.xlu1 %695 }
 0x72b   : > { %v1110_v27 = vpop.eup %1109 }
 0x72c   : > { %v584_v29 = vmul.f32 %v1110_v27, %v1108_v23 }
 0x72e   : > { %v585_v31 = vpack.c.bf16 %v584_v29, %v584_v29 }
 0x730   : > { %1043 = vmatmul.mubr.msk.bf16.vlgmr.msra.gmra.mrb[12].mxu0 %vm236_vm5, %v585_v31 }
 0x731   : > { %1055 = vmatpush3.bf16.xpose.msra.mxu0 %v703_v30  ;;  %1056 = vmatprep.mubr.msk.bf16.mxu0 %vm1124_vm0, %v1123_v0 }
 0x732   : > { %1066 = vmatprep.subr.bf16.mxu0 %v1123_v0 }
 0x738   : > { %1057 = vmatmul.mubr.msk.bf16.vlgmr.msra.gmra.mrb[16].mxu0 %vm176_vm1, %v696_v6 }
 0x739   : > { %1070 = vmatprep.mubr.msk.bf16.mxu0 %vm1124_vm0, %v1123_v0  ;;  %1067 = vmatpush3.bf16.msra.mxu0 %v1097_v50 }
 0x73a   : > { %1068 = vmatprep.subr.bf16.mxu0 %v1123_v0 }
 0x803   : > { %v628_v32 = vpop.f32.mrb[12].mxu0 }
 0x804   : > { %v634_v33 = vpack.c.bf16 %v628_v32, %v628_v32  ;;  %v1044_v34 = vpop.f32.mrb[13].mxu0 }
 0x805   : > { %v631_v35 = vpop.f32.mrb[14].mxu0 }
 0x806   : > { %v1045_v36 = vpop.f32.mrb[15].mxu0  ;;  %1051 = vmatmul.mubr.msk.bf16.vlgmr.msra.gmra.mrb[16].mxu1 %vm176_vm1, %v634_v33 }
 0x807   : > { %1062 = vmatprep.mubr.msk.bf16.mxu1 %vm1124_vm0, %v1123_v0 }
 0x80b   : > { %v739_v37 = vpop.f32.mrb[16].mxu0 }
 0x80c   : > { %v1058_v38 = vpop.f32.mrb[17].mxu0  ;;  %v745_v40 = vsel %vm223_vm2, %v739_v37, -inf }
 0x80d   : > { %746 = vmax.xlane.f32.xlu0 %v745_v40  ;;  %v742_v41 = vpop.f32.mrb[18].mxu0 }
 0x80e   : > { %v1059_v42 = vpop.f32.mrb[19].mxu0 }
 0x823   : > { %757 = vrot.lane.b32.xlu0 %v1199_v39, %s1128_s28  ;;  %v1098_v39 = vld [vmem:[%s1295_s1 + $0x38] sm:$0xff]  }
 0x824   : > { %1069 = vmatpush3.bf16.msra.mxu0 %v1098_v39 }
 0x89a   : > { %v747_v43 = vpop.xlane.xlu0 %746 }
 0x89b   : > { %v748_v44 = vsub.f32 %v739_v37, %v747_v43 }
 0x89d   : > { %v749_v45 = vmul.f32 1.442695, %v748_v44 }
 0x89e   : > { %v758_v48 = vpop.permute.xlu0 %757 }
 0x89f   : > { %1111 = vpow2.f32 %v749_v45  ;;  %v763_v49 = vand.u32 %v758_v48, %v1186_v21 }
 0x8a1   : > { %1061 = vmatpush3.bf16.msra.mxu1 %v763_v49 }
 0x8a9   : > { %v1112_v46 = vpop.eup %1111 }
 0x8aa   : > { %v751_v47 = vsel %vm223_vm2, %v1112_v46, 0.0 }
 0x8ab   : > { %752 = vadd.xlane.f32.xlu1 %v751_v47 }
 0x8d9   : > { %v688_v51 = vpop.f32.mrb[16].mxu1 }
 0x8da   : > { %v694_v52 = vadd.f32 %v688_v51, %v1239_v7  ;;  %v1052_v53 = vpop.f32.mrb[17].mxu1 }
 0x8db   : > { %v691_v54 = vpop.f32.mrb[18].mxu1 }
 0x8dc   : > { %v1053_v21 = vpop.f32.mrb[19].mxu1 }
 0x938   : > { %v753_v55 = vpop.xlane.xlu1 %752 }
 0x939   : > { %1113 = vrcp.f32 %v753_v55 }
 0x943   : > { %v1114_v56 = vpop.eup %1113 }
 0x944   : > { %v755_v57 = vmul.f32 %v1114_v56, %v1112_v46 }
 0x946   : > { %v756_v58 = vpack.c.bf16 %v755_v57, %v755_v57 }
 0x948   : > { %1063 = vmatmul.mubr.msk.bf16.vlgmr.msra.gmra.mrb[20].mxu1 %vm236_vm5, %v756_v58 }
 0xa1b   : > { %v799_v59 = vpop.f32.mrb[20].mxu1 }
 0xa1c   : > { %v805_v60 = vpack.c.bf16 %v799_v59, %v799_v59  ;;  %v1064_v61 = vpop.f32.mrb[21].mxu1 }
 0xa1d   : > { %v802_v62 = vpop.f32.mrb[22].mxu1 }
 0xa1e   : > { %v1065_v0 = vpop.f32.mrb[23].mxu1  ;;  %1071 = vmatmul.mubr.msk.bf16.vlgmr.msra.gmra.mrb[20].mxu0 %vm176_vm1, %v805_v60 }
 0xaf1   : > { %v859_v63 = vpop.f32.mrb[20].mxu0 }
 0xaf2   : > { %v865_v2 = vadd.f32 %v859_v63, %v694_v52  ;;  %v1072_v3 = vpop.f32.mrb[21].mxu0 }
 0xaf3   : > { %v862_v4 = vpop.f32.mrb[22].mxu0 }
 0xaf4   : > { %v873_v5 = vadd.f32 %v963_v1, %v865_v2  ;;  %v1073_v7 = vpop.f32.mrb[23].mxu0 }
 0xaf6   : > { %v874_v9 = vpack.c.bf16 %v873_v5, %v873_v5 }
 0xaf8   : > { %v879_v10 = vsel %vm877_vm7, %v874_v9, %v878_v8 }
 0xaf9   : > { %880 = vst [vmem:[%s168_s17] sm:$0x7] %v879_v10 }
 0xafa PF: > { %s13_s12 = sadd.s32 1, %s1121_s12  }
 0xafb   : > { %p10_p4 = scmp.ge.s32.totalorder %s13_s12, 4  }
 0xafd   :  { %12 = sbr.rel (!%p10_p4) target bundleno = 1 (0x1), region = 62 }

// kernel: vit_forward.19
= control target key start
LH: loop header
LB: loop body
LE: loop exit
PB: predicated region body
PF: predicated region fallthrough
CT: control target
= control target key end

     0   :  { %v226_v1 = vmov 0.0   ;;  %vm227_vm0 = vmmov 0   ;;  %vm168_vm1 = vcmask 80896   ;;  %s297_s0 = inlined_call_operand.vmem [shape: f32[8,128], index: 0, kind: input, shape index: {}]   ;;  %s298_s3 = inlined_call_operand.vmem [shape: bf16[128,10], index: 3, kind: input, shape index: {}]   ;;  %s299_s1 = inlined_call_operand.vmem [shape: f32[1,128], index: 1, kind: input, shape index: {}]   ;;  %s300_s2 = inlined_call_operand.vmem [shape: f32[1,128], index: 2, kind: input, shape index: {}]   ;;  %s301_s4 = inlined_call_operand.vmem [shape: f32[1,10], index: 4, kind: input, shape index: {}]   ;;  %s302_s5 = inlined_call_operand.vmem [shape: f32[8,10], index: 5, kind: output, shape index: {}]  }
   0x1   :  { %v25_v0 = vld [vmem:[%s297_s0] sm:$0xff]  ;;  %194 = vmatprep.subr.bf16.mxu0 %v226_v1  ;;  %v217_v7 = vld [vmem:[%s298_s3 + $0x8] sm:$0xff]   ;;  %v218_v8 = vld [vmem:[%s298_s3 + $0x10] sm:$0xff]   ;;  %210 = vmatprep.mubr.msk.bf16.mxu0 %vm227_vm0, %v226_v1 }
   0x2   :  { %26 = vadd.xlane.f32.xlu0 %v25_v0  ;;  %v216_v6 = vld [vmem:[%s298_s3] sm:$0xff]   ;;  %v219_v9 = vld [vmem:[%s298_s3 + $0x18] sm:$0xff]   ;;  %v221_v11 = vld [vmem:[%s298_s3 + $0x28] sm:$0xff]  }
   0x3   :  { %195 = vmatpush3.bf16.msra.mxu0 %v216_v6  ;;  %v220_v10 = vld [vmem:[%s298_s3 + $0x20] sm:$0xff]   ;;  %v222_v12 = vld [vmem:[%s298_s3 + $0x30] sm:$0xff]   ;;  %v223_v13 = vld [vmem:[%s298_s3 + $0x38] sm:$0xff]  }
   0x4   :  { %196 = vmatprep.subr.bf16.mxu0 %v226_v1  ;;  %v174_v18 = vld [vmem:[%s299_s1] ss:$0 sm:$0xff] }
   0x5   :  { %v175_v20 = vld [vmem:[%s300_s2] ss:$0 sm:$0xff] }
   0x6   :  { %v176_v25 = vld [vmem:[%s301_s4] ss:$0 sm:$0xff] }
   0x7   :  { %197 = vmatpush3.bf16.msra.mxu0 %v217_v7 }
   0x8   :  { %198 = vmatprep.subr.bf16.mxu0 %v226_v1 }
   0xb   :  { %199 = vmatpush3.bf16.msra.mxu0 %v218_v8 }
   0xc   :  { %200 = vmatprep.subr.bf16.mxu0 %v226_v1 }
   0xf   :  { %201 = vmatpush3.bf16.msra.mxu0 %v219_v9 }
  0x10   :  { %202 = vmatprep.subr.bf16.mxu0 %v226_v1 }
  0x13   :  { %203 = vmatpush3.bf16.msra.mxu0 %v220_v10 }
  0x14   :  { %204 = vmatprep.subr.bf16.mxu0 %v226_v1 }
  0x17   :  { %205 = vmatpush3.bf16.msra.mxu0 %v221_v11 }
  0x18   :  { %206 = vmatprep.subr.bf16.mxu0 %v226_v1 }
  0x1b   :  { %207 = vmatpush3.bf16.msra.mxu0 %v222_v12 }
  0x1c   :  { %208 = vmatprep.subr.bf16.mxu0 %v226_v1 }
  0x1f   :  { %209 = vmatpush3.bf16.msra.mxu0 %v223_v13 }
  0x8f   :  { %v27_v2 = vpop.xlane.xlu0 %26 }
  0x90   :  { %v29_v3 = vmul.f32 0.0078125, %v27_v2 }
  0x92   :  { %v30_v4 = vsub.f32 %v25_v0, %v29_v3 }
  0x94   :  { %v31_v5 = vmul.f32 %v30_v4, %v30_v4 }
  0x96   :  { %32 = vadd.xlane.f32.xlu0 %v31_v5 }
 0x123   :  { %v33_v14 = vpop.xlane.xlu0 %32 }
 0x124   :  { %v34_v15 = vmul.f32 0.0078125, %v33_v14 }
 0x126   :  { %v35_v16 = vadd.f32 1e-05, %v34_v15 }
 0x128   :  { %224 = vrsqrt.f32 %v35_v16 }
 0x132   :  { %v225_v17 = vpop.eup %224 }
 0x133   :  { %v37_v19 = vmul.f32 %v225_v17, %v30_v4 }
 0x135   :  { %v45_v21 = vmul.f32 %v174_v18, %v37_v19 }
 0x137   :  { %v53_v22 = vadd.f32 %v175_v20, %v45_v21 }
 0x139   :  { %v54_v23 = vpack.c.bf16 %v53_v22, %v53_v22 }
 0x13b   :  { %55 = vst [vmem:[#allocation2] sm:$0xf] %v54_v23 }
 0x142   :  { %v56_v24 = vld [vmem:[#allocation2] sm:$0xf] }
 0x143   :  { %211 = vmatmul.mubr.bf16.vlgmr.msra.gmra.mrb[0].mxu0 %v56_v24 }
 0x216   :  { %v162_v26 = vpop.f32.mrb[0].mxu0 }
 0x217   :  { %v163_v27 = vadd.f32 %v176_v25, %v162_v26  ;;  %v212_v28 = vpop.f32.mrb[1].mxu0 }
 0x218   :  { %v165_v29 = vpop.f32.mrb[2].mxu0 }
 0x219   :  { %169 = vst.msk [vmem:[%s302_s5] sm:$0xff] %vm168_vm1, %v163_v27  ;;  %v213_v30 = vpop.f32.mrb[3].mxu0 }

// kernel: vit_forward.14
= control target key start
LH: loop header
LB: loop body
LE: loop exit
PB: predicated region body
PF: predicated region fallthrough
CT: control target
= control target key end

     0   :  { %v584_v26 = vmov 0   ;;  %s763_s0 = inlined_call_operand.vmem [shape: f32[16,128], index: 0, kind: input, shape index: {}]   ;;  %s764_s1 = inlined_call_operand.vmem [shape: bf16[16,128], index: 1, kind: input, shape index: {}]   ;;  %s765_s4 = inlined_call_operand.vmem [shape: bf16[128,256], index: 4, kind: input, shape index: {}]   ;;  %s766_s6 = inlined_call_operand.vmem [shape: bf16[256,128], index: 6, kind: input, shape index: {}]   ;;  %s767_s2 = inlined_call_operand.vmem [shape: f32[1,128], index: 2, kind: input, shape index: {}]   ;;  %s768_s3 = inlined_call_operand.vmem [shape: f32[1,128], index: 3, kind: input, shape index: {}]   ;;  %s769_s5 = inlined_call_operand.vmem [shape: f32[1,256], index: 5, kind: input, shape index: {}]   ;;  %s770_s7 = inlined_call_operand.vmem [shape: f32[1,128], index: 7, kind: input, shape index: {}]   ;;  %s771_s8 = inlined_call_operand.vmem [shape: f32[16,128], index: 8, kind: output, shape index: {}]  }
   0x1   :  { %v34_v0 = vld [vmem:[%s763_s0] sm:$0xff]  ;;  %v35_v4 = vld [vmem:[%s763_s0 + $0x8] sm:$0xff]  ;;  %v535_v9 = vld [vmem:[%s765_s4 + $0x14] ss:$8 sps:$4 sm:$0xff]   ;;  %228 = vmatprep.mubr.bf16.mxu0 %v584_v26 }
   0x2   :  { %v502_v1 = vld [vmem:[%s764_s1] sm:$0xff]   ;;  %v537_v18 = vld [vmem:[%s765_s4 + $0x10] ss:$8 sps:$4 sm:$0xff]   ;;  %v541_v21 = vld [vmem:[%s765_s4 + $0x34] ss:$8 sps:$4 sm:$0xff]  }
   0x3   :  { %v503_v2 = vunpack.c.l.bf16 %v502_v1  ;;  %v508_v3 = vunpack.c.h.bf16 %v502_v1  ;;  %v532_v7 = vld [vmem:[%s765_s4 + $0x4] ss:$8 sps:$4 sm:$0xff]   ;;  %v534_v8 = vld [vmem:[%s765_s4] ss:$8 sps:$4 sm:$0xff]   ;;  %v543_v22 = vld [vmem:[%s765_s4 + $0x30] ss:$8 sps:$4 sm:$0xff]   ;;  %v106_v1 = vlaneseq }
   0x4   :  { %196 = vmatprep.subr.bf16.mxu0 %v532_v7  ;;  %v538_v19 = vld [vmem:[%s765_s4 + $0x24] ss:$8 sps:$4 sm:$0xff]   ;;  %v540_v20 = vld [vmem:[%s765_s4 + $0x20] ss:$8 sps:$4 sm:$0xff]   ;;  %v547_v25 = vld [vmem:[%s765_s4 + $0x54] ss:$8 sps:$4 sm:$0xff]  }
   0x5   :  { %v639_v5 = vadd.f32 %v503_v2, %v34_v0  ;;  %v642_v6 = vadd.f32 %v508_v3, %v35_v4  ;;  %197 = vmatpush1.bf16.msra.mxu0 %v534_v8  ;;  %v544_v23 = vld [vmem:[%s765_s4 + $0x44] ss:$8 sps:$4 sm:$0xff]   ;;  %v546_v24 = vld [vmem:[%s765_s4 + $0x40] ss:$8 sps:$4 sm:$0xff]   ;;  %v549_v27 = vld [vmem:[%s765_s4 + $0x50] ss:$8 sps:$4 sm:$0xff]  }
   0x6   :  { %198 = vmatprep.subr.bf16.mxu0 %v535_v9  ;;  %v550_v28 = vld [vmem:[%s765_s4 + $0x64] ss:$8 sps:$4 sm:$0xff]   ;;  %v552_v29 = vld [vmem:[%s765_s4 + $0x60] ss:$8 sps:$4 sm:$0xff]   ;;  %v553_v30 = vld [vmem:[%s765_s4 + $0x74] ss:$8 sps:$4 sm:$0xff]  }
   0x7   :  { %42 = vadd.xlane.f32.xlu0 %v639_v5  ;;  %v555_v31 = vld [vmem:[%s765_s4 + $0x70] ss:$8 sps:$4 sm:$0xff]   ;;  %v556_v32 = vld [vmem:[%s766_s6 + $0x40] sm:$0xff]   ;;  %v558_v34 = vld [vmem:[%s766_s6 + $0x48] sm:$0xff]   ;;  %v107_v2 = vshrl.u32 %v106_v1, 7 }
   0x8   :  { %v557_v33 = vld [vmem:[%s766_s6] sm:$0xff]   ;;  %509 = vmatprep.subr.bf16.mxu1 %v556_v32  ;;  %v559_v35 = vld [vmem:[%s766_s6 + $0x8] sm:$0xff]   ;;  %v560_v53 = vld [vmem:[%s766_s6 + $0x50] sm:$0xff]  }
   0x9   :  { %199 = vmatpush1.bf16.msra.mxu0 %v537_v18  ;;  %510 = vmatpush3.bf16.msra.mxu1 %v557_v33  ;;  %v466_v44 = vld [vmem:[%s767_s2] ss:$0 sm:$0xff]  ;;  %v561_v54 = vld [vmem:[%s766_s6 + $0x10] sm:$0xff]   ;;  %v562_v55 = vld [vmem:[%s766_s6 + $0x58] sm:$0xff]   ;;  %v108_v3 = vsub.s32 0, %v107_v2  ;;  %v112_v7 = vsub.s32 1, %v107_v2 }
   0xa   :  { %200 = vmatprep.subr.bf16.mxu0 %v538_v19  ;;  %511 = vmatprep.subr.bf16.mxu1 %v558_v34  ;;  %v467_v48 = vld [vmem:[%s768_s3] ss:$0 sm:$0xff]  ;;  %v563_v56 = vld [vmem:[%s766_s6 + $0x18] sm:$0xff]   ;;  %v566_v59 = vld [vmem:[%s766_s6 + $0x68] sm:$0xff]  }
   0xb   :  { %44 = vadd.xlane.f32.xlu0 %v642_v6  ;;  %v564_v57 = vld [vmem:[%s766_s6 + $0x60] sm:$0xff]   ;;  %v567_v60 = vld [vmem:[%s766_s6 + $0x28] sm:$0xff]   ;;  %v568_v61 = vld [vmem:[%s766_s6 + $0x70] sm:$0xff]  }
   0xc   :  { %v565_v58 = vld [vmem:[%s766_s6 + $0x20] sm:$0xff]   ;;  %v569_v62 = vld [vmem:[%s766_s6 + $0x30] sm:$0xff]   ;;  %v570_v63 = vld [vmem:[%s766_s6 + $0x78] sm:$0xff]  }
   0xd   :  { %201 = vmatpush1.bf16.msra.mxu0 %v540_v20  ;;  %512 = vmatpush3.bf16.msra.mxu1 %v559_v35  ;;  %v571_v0 = vld [vmem:[%s766_s6 + $0x38] sm:$0xff]   ;;  %v104_v4 = vld [vmem:[%s769_s5] sm:$0x3] }
   0xe   :  { %202 = vmatprep.subr.bf16.mxu0 %v541_v21  ;;  %513 = vmatprep.subr.bf16.mxu1 %v560_v53  ;;  %v109_v8 = vrot.slane %v104_v4, %v108_v3  ;;  %v113_v9 = vrot.slane %v104_v4, %v112_v7 }
  0x11   :  { %203 = vmatpush1.bf16.msra.mxu0 %v543_v22  ;;  %514 = vmatpush3.bf16.msra.mxu1 %v561_v54 }
  0x12   :  { %204 = vmatprep.subr.bf16.mxu0 %v544_v23  ;;  %515 = vmatprep.subr.bf16.mxu1 %v562_v55 }
  0x15   :  { %205 = vmatpush1.bf16.msra.mxu0 %v546_v24  ;;  %516 = vmatpush3.bf16.msra.mxu1 %v563_v56 }
  0x16   :  { %206 = vmatprep.subr.bf16.mxu0 %v547_v25  ;;  %517 = vmatprep.subr.bf16.mxu1 %v564_v57 }
  0x19   :  { %207 = vmatpush1.bf16.msra.mxu0 %v549_v27  ;;  %518 = vmatpush3.bf16.msra.mxu1 %v565_v58 }
  0x1a   :  { %208 = vmatprep.subr.bf16.mxu0 %v550_v28  ;;  %519 = vmatprep.subr.bf16.mxu1 %v566_v59 }
  0x1d   :  { %209 = vmatpush1.bf16.msra.mxu0 %v552_v29  ;;  %520 = vmatpush3.bf16.msra.mxu1 %v567_v60 }
  0x1e   :  { %210 = vmatprep.subr.bf16.mxu0 %v553_v30  ;;  %521 = vmatprep.subr.bf16.mxu1 %v568_v61 }
  0x21   :  { %211 = vmatpush1.bf16.msra.mxu0 %v555_v31  ;;  %522 = vmatpush3.bf16.msra.mxu1 %v569_v62 }
  0x22   :  { %523 = vmatprep.subr.bf16.mxu1 %v570_v63 }
  0x25   :  { %524 = vmatpush3.bf16.msra.mxu1 %v571_v0 }
  0x94   :  { %v43_v10 = vpop.xlane.xlu0 %42 }
  0x95   :  { %v47_v11 = vmul.f32 0.0078125, %v43_v10 }
  0x97   :  { %v49_v12 = vsub.f32 %v639_v5, %v47_v11 }
  0x98   :  { %v45_v13 = vpop.xlane.xlu0 %44 }
  0x99   :  { %v48_v14 = vmul.f32 0.0078125, %v45_v13  ;;  %v51_v15 = vmul.f32 %v49_v12, %v49_v12 }
  0x9b   :  { %v50_v16 = vsub.f32 %v642_v6, %v48_v14  ;;  %53 = vadd.xlane.f32.xlu1 %v51_v15 }
  0x9d   :  { %v52_v17 = vmul.f32 %v50_v16, %v50_v16 }
  0x9f   :  { %55 = vadd.xlane.f32.xlu1 %v52_v17 }
 0x128   :  { %v54_v36 = vpop.xlane.xlu1 %53 }
 0x129   :  { %v57_v37 = vmul.f32 0.0078125, %v54_v36 }
 0x12b   :  { %v59_v38 = vadd.f32 1e-05, %v57_v37 }
 0x12c   :  { %v56_v39 = vpop.xlane.xlu1 %55 }
 0x12d   :  { %572 = vrsqrt.f32 %v59_v38  ;;  %v58_v40 = vmul.f32 0.0078125, %v56_v39 }
 0x12f   :  { %v60_v41 = vadd.f32 1e-05, %v58_v40 }
 0x131   :  { %574 = vrsqrt.f32 %v60_v41 }
 0x137   :  { %v573_v42 = vpop.eup %572 }
 0x138   :  { %v63_v43 = vmul.f32 %v573_v42, %v49_v12  ;;  %v500_v42 = vld [vmem:[%s770_s7] ss:$0 sm:$0xff] }
 0x13a   :  { %v72_v47 = vmul.f32 %v466_v44, %v63_v43 }
 0x13b   :  { %v575_v45 = vpop.eup %574 }
 0x13c   :  { %v64_v46 = vmul.f32 %v575_v45, %v50_v16  ;;  %v81_v50 = vadd.f32 %v467_v48, %v72_v47 }
 0x13e   :  { %v73_v49 = vmul.f32 %v466_v44, %v64_v46 }
 0x140   :  { %v82_v51 = vadd.f32 %v467_v48, %v73_v49 }
 0x142   :  { %v83_v52 = vpack.c.bf16 %v82_v51, %v81_v50 }
 0x144   :  { %229 = vmatmul.mubr.bf16.vlgmr.msra.gmra.mrb[0].mxu0 %v83_v52 }
 0x217   :  { %v230_v10 = vpop.f32.mrb[0].mxu0 }
 0x218   :  { %v231_v11 = vadd.f32 %v230_v10, %v109_v8  ;;  %v232_v12 = vpop.f32.mrb[1].mxu0 }
 0x219   :  { %v233_v13 = vadd.f32 %v232_v12, %v113_v9  ;;  %v234_v14 = vpop.f32.mrb[2].mxu0 }
 0x21a   :  { %v243_v15 = vmul.f32 0.70710677, %v231_v11  ;;  %v235_v16 = vadd.f32 %v234_v14, %v109_v8  ;;  %v236_v17 = vpop.f32.mrb[3].mxu0  ;;  %v239_v28 = vmul.f32 0.5, %v231_v11 }
 0x21b   :  { %v244_v18 = vmul.f32 0.70710677, %v233_v13  ;;  %v237_v19 = vadd.f32 %v236_v17, %v113_v9  ;;  %v240_v31 = vmul.f32 0.5, %v233_v13 }
 0x21c   :  { %576 = verf.f32 %v243_v15  ;;  %v245_v20 = vmul.f32 0.70710677, %v235_v16  ;;  %v241_v29 = vmul.f32 0.5, %v235_v16 }
 0x21d   :  { %578 = verf.f32 %v244_v18  ;;  %v246_v21 = vmul.f32 0.70710677, %v237_v19  ;;  %v242_v32 = vmul.f32 0.5, %v237_v19 }
 0x21e   :  { %580 = verf.f32 %v245_v20 }
 0x21f   :  { %582 = verf.f32 %v246_v21 }
 0x226   :  { %v577_v22 = vpop.eup %576 }
 0x227   :  { %v579_v23 = vpop.eup %578  ;;  %v251_v24 = vadd.f32 1.0, %v577_v22 }
 0x228   :  { %v581_v25 = vpop.eup %580  ;;  %v252_v26 = vadd.f32 1.0, %v579_v23 }
 0x229   :  { %v583_v27 = vpop.eup %582  ;;  %v253_v30 = vadd.f32 1.0, %v581_v25  ;;  %v255_v34 = vmul.f32 %v251_v24, %v239_v28 }
 0x22a   :  { %v254_v33 = vadd.f32 1.0, %v583_v27  ;;  %v256_v36 = vmul.f32 %v252_v26, %v240_v31 }
 0x22b   :  { %v257_v35 = vmul.f32 %v253_v30, %v241_v29 }
 0x22c   :  { %v258_v37 = vmul.f32 %v254_v33, %v242_v32 }
 0x22d   :  { %v261_v38 = vpack.c.bf16 %v257_v35, %v255_v34 }
 0x22e   :  { %v262_v39 = vpack.c.bf16 %v258_v37, %v256_v36 }
 0x230   :  { %423 = vmatprep.mubr.bf16.mxu1 %v262_v39 }
 0x231   :  { %424 = vmatmul.mubr.bf16.vlgmr.msra.gmra.mrb[0].mxu1 %v261_v38 }
 0x304   :  { %v525_v40 = vpop.f32.mrb[0].mxu1 }
 0x305   :  { %v526_v41 = vpop.f32.mrb[1].mxu1 }
 0x306   :  { %v527_v43 = vadd.f32 %v526_v41, %v525_v40  ;;  %v528_v44 = vpop.f32.mrb[2].mxu1 }
 0x307   :  { %v529_v45 = vpop.f32.mrb[3].mxu1 }
 0x308   :  { %v456_v46 = vadd.f32 %v527_v43, %v500_v42  ;;  %v530_v47 = vadd.f32 %v529_v45, %v528_v44 }
 0x30a   :  { %v458_v48 = vadd.f32 %v456_v46, %v639_v5  ;;  %v457_v49 = vadd.f32 %v530_v47, %v500_v42 }
 0x30c   :  { %460 = vst [vmem:[%s771_s8] sm:$0xff] %v458_v48  ;;  %v459_v50 = vadd.f32 %v457_v49, %v642_v6 }
 0x30e   :  { %461 = vst [vmem:[%s771_s8 + $0x8] sm:$0xff] %v459_v50 }

</bundles_post_ra>
